<compile_context>
chip_gen: v6e
topology: v6e:2x2x1
jax: 0.10.0
libtpu: 0.0.40
codegen_flags: <defaults>
</compile_context>

<pallas_src>
import functools
import math

import jax
import jax.numpy as jnp
from jax import lax
from jax.experimental import pallas as pl
from jax.experimental.pallas import tpu as pltpu

_NEG_INF = -1e30  # finite "-inf": avoids inf-inf NaNs in the online-softmax update


def _self_attention_kernel(
    gd_ref,                      # SMEM (2,)  f32: [gamma, delta]
    nv_ref,                      # SMEM (1,)  i32: true N = H*W (pre-padding)
    xq_ref,                      # VMEM (1, C, Tq)  x, query tile (input dtype)
    xk_ref,                      # VMEM (1, C, Tk)  x, key tile
    att_ct_ref,                  # VMEM (1, C, C)   mm  channel attention, transposed
    wq_ref, bq_ref,              # (Cq_pad, C) mm, (Cq_pad, 1) f32
    wkv_ref, bkv_ref,            # (Cq_pad + C, C) mm, (Cq_pad + C, 1) f32
    o_ref,                       # VMEM (1, C, Tq)
    qs_ref,                      # VMEM (Cq_pad, Tq) mm  query projection of this q-tile
    m_ref,                       # VMEM (1, Tq)  f32  running max
    l_ref,                       # VMEM (1, Tq)  f32  running denom
    acc_ref,                     # VMEM (C, Tq)  f32  running spatial output
    *, mm_dtype, cq_pad,
):
    ki = pl.program_id(2)
    nk = pl.num_programs(2)
    tk = xk_ref.shape[2]

    xk_mm = xk_ref[0].astype(mm_dtype)                                 # (C, Tk)

    # ---------- init on the first key tile of this (batch, query-tile) ----------
    @pl.when(ki == 0)
    def _init():
        m_ref[...] = jnp.full_like(m_ref, _NEG_INF)
        l_ref[...] = jnp.zeros_like(l_ref)
        acc_ref[...] = jnp.zeros_like(acc_ref)
        # 1x1-conv query projection for this query tile: (Cq_pad, Tq).
        # (The only place the query tile is touched before finalize.)
        q = jnp.dot(wq_ref[...], xq_ref[0].astype(mm_dtype),
                    preferred_element_type=jnp.float32) + bq_ref[...]
        qs_ref[...] = q.astype(mm_dtype)

    # ---------- fused K/V projection: one MXU matmul per key tile ----------
    kv = jnp.dot(wkv_ref[...], xk_mm,
                 preferred_element_type=jnp.float32) + bkv_ref[...]    # (Cq_pad+C, Tk)
    k = kv[:cq_pad]                                                    # (Cq_pad, Tk)
    v = kv[cq_pad:]                                                    # (C, Tk)

    # scores s[t, m] = sum_cq k[cq, t] * q[cq, m]  -> (Tk, Tq), keys on sublanes.
    # Zero-padded Cq rows contribute exactly 0.
    s = lax.dot_general(k.astype(mm_dtype), qs_ref[...],
                        dimension_numbers=(((0,), (0,)), ((), ())),
                        preferred_element_type=jnp.float32)

    # padded-key mask as a (Tk, 1) additive bias (only nonzero on the last tile)
    key_ids = ki * tk + lax.broadcasted_iota(jnp.int32, (tk, 1), 0)
    s = s + jnp.where(key_ids < nv_ref[0], 0.0, _NEG_INF)

    # ---------- flash-style online softmax over key tiles ----------
    m_prev = m_ref[...]                                                # (1, Tq)
    m_new = jnp.maximum(m_prev, jnp.max(s, axis=0, keepdims=True))
    alpha = jnp.exp(m_prev - m_new)                                    # (1, Tq)
    p = jnp.exp(s - m_new)                                             # (Tk, Tq)
    l_ref[...] = alpha * l_ref[...] + jnp.sum(p, axis=0, keepdims=True)
    # acc[c, m] += sum_t v[c, t] * p[t, m]
    acc_ref[...] = alpha * acc_ref[...] + lax.dot_general(
        v.astype(mm_dtype), p.astype(mm_dtype),
        dimension_numbers=(((1,), (0,)), ((), ())),
        preferred_element_type=jnp.float32)                            # (C, Tq)
    m_ref[...] = m_new

    # ---------- finalize + gate on the last key tile ----------
    @pl.when(ki == nk - 1)
    def _finalize():
        xq = xq_ref[0]                                                 # (C, Tq)
        # channel branch: c_out[i, n] = sum_d att_c[d, i] x[d, n] = att_c^T @ x
        c_out = jnp.dot(att_ct_ref[0], xq.astype(mm_dtype),
                        preferred_element_type=jnp.float32)            # (C, Tq)
        # spatial output for this query tile
        s_out = acc_ref[...] * pl.reciprocal(l_ref[...], approx=True)  # (C, Tq)

        gamma = gd_ref[0]
        delta = gd_ref[1]
        att = 1.0 + jax.nn.sigmoid(c_out * gamma * (s_out * delta))
        o_ref[0] = (att * xq.astype(jnp.float32)).astype(o_ref.dtype)


def _vmem_capacity_bytes():
    """Physical per-core VMEM (generation-aware); conservative fallback."""
    try:
        info = pltpu.get_tpu_info()
        cap = getattr(info, "vmem_capacity_bytes", None)
        if cap:
            return int(cap)
    except Exception:
        pass
    return 64 * 1024 * 1024  # v7x-sized conservative default


def self_attention(x, wq, bq, wk, bk, wv, bv, gamma, delta,
                   *, tile_q=256, tile_k=512, mm_dtype=jnp.bfloat16):
    """x: (B, C, H, W). Conv2d-1x1 weights flattened to (out, in), biases (out,).

    tile_q / tile_k: spatial (lane) tiles, multiples of 128 (they are clamped
    down for tiny inputs).  Guidance:
      * v6e: >= 256 on both to fill the 2x256^2 MXU; 128 MiB VMEM gives room.
      * v5e: 128-aligned is enough for the 128^2 MXU, but Tk >= 256 amortizes
        the key-tile DMA (lowest HBM bandwidth of the three).
      * v7x: 256 is fine for moderate C; the VMEM limit below is derived from
        the physical 64 MiB with ~20% headroom, so size Tq/Tk to fit it.
    """
    B, C, H, W = x.shape
    N = H * W
    Cq = wq.shape[0]
    assert tile_q % 128 == 0 and tile_k % 128 == 0, \
        "spatial tiles must be multiples of 128 (lane-dense)"

    # Clamp tiles for tiny inputs and pad N to a common multiple of both tiles.
    n_base = pl.cdiv(N, 128) * 128
    tile_q = min(tile_q, n_base)
    tile_k = min(tile_k, n_base)
    lcm = math.lcm(tile_q, tile_k)
    n_pad = pl.cdiv(N, lcm) * lcm
    ntq = n_pad // tile_q
    ntk = n_pad // tile_k

    # Pad the q/k channel count to a sublane multiple so the fused K/V
    # projection result can be sliced at an aligned sublane boundary.
    cq_pad = max(8, ((Cq + 7) // 8) * 8)

    x_flat = x.reshape(B, C, N)
    if n_pad != N:
        x_flat = jnp.pad(x_flat, ((0, 0), (0, 0), (0, n_pad - N)))

    # ---- channel attention (batch-only) hoisted out of the streaming kernel ----
    # Zero-padded spatial columns contribute 0 to the energy, so the padded
    # view can be used directly.  Computed in f32 for accuracy.
    xf32 = x_flat.astype(jnp.float32)
    energy_c = jnp.einsum('bcn,bdn->bcd', xf32, xf32)
    att_c = jax.nn.softmax(energy_c, axis=-1)
    att_ct = jnp.swapaxes(att_c, 1, 2).astype(mm_dtype)   # (B, C, C), transposed

    # ---- projection weights: pad Cq, fuse Wk/Wv into one matmul operand ----
    f32 = jnp.float32
    wq_p = jnp.zeros((cq_pad, C), f32).at[:Cq].set(wq.astype(f32)).astype(mm_dtype)
    bq_p = jnp.zeros((cq_pad, 1), f32).at[:Cq, 0].set(bq.astype(f32))
    wk_p = jnp.zeros((cq_pad, C), f32).at[:Cq].set(wk.astype(f32))
    bk_p = jnp.zeros((cq_pad, 1), f32).at[:Cq, 0].set(bk.astype(f32))
    wkv = jnp.concatenate([wk_p, wv.astype(f32)], axis=0).astype(mm_dtype)
    bkv = jnp.concatenate([bk_p, bv.reshape(C, 1).astype(f32)], axis=0)
    # TODO(synk): for very large C, precompute K/V slabs once per batch instead
    # of re-projecting the key tile per query tile (trade HBM traffic for MXU).

    gd = jnp.stack([jnp.asarray(gamma, f32).reshape(()),
                    jnp.asarray(delta, f32).reshape(())])
    nv = jnp.array([N], dtype=jnp.int32)

    itemsize = jnp.dtype(x.dtype).itemsize
    mm_size = jnp.dtype(mm_dtype).itemsize

    # ---- VMEM budget (double-buffered tiles + weights + scratch + temporaries),
    #      capped at ~80% of the physical per-core VMEM of this generation ----
    block_bytes = (
        2 * C * tile_q * itemsize                       # x query tile (x2 buf)
        + 2 * C * tile_k * itemsize                     # x key tile (x2 buf)
        + 2 * C * tile_q * itemsize                     # output tile (x2 buf)
        + 2 * C * C * mm_size                           # att_c^T tile (x2 buf)
        + 2 * (cq_pad + (cq_pad + C)) * C * mm_size     # Wq + Wkv (x2 buf)
        + 2 * (2 * cq_pad + C) * 4                      # biases
        + cq_pad * tile_q * mm_size                     # q-projection scratch
        + (C * tile_q + 2 * tile_q) * 4                 # flash acc / max / denom
        + 3 * tile_k * tile_q * 4                       # f32 score/softmax temps
        + (cq_pad + C) * tile_k * 4)                    # fused K/V f32 temp
    vmem_limit = int(max(16 << 20,
                         min(max(2 * block_bytes, 32 << 20),
                             int(0.8 * _vmem_capacity_bytes()))))

    # ---- advisory cost estimate matching the tiled schedule ----
    flops = int(
        B * ntq * ntk * (2 * (cq_pad + C) * C * tile_k      # fused K/V projection
                         + 2 * cq_pad * tile_k * tile_q     # scores
                         + 2 * C * tile_k * tile_q)         # P @ V
        + B * ntq * (2 * cq_pad * C * tile_q                # Q projection
                     + 2 * C * C * tile_q))                 # channel apply
    transcendentals = int(B * ntq * ntk * (tile_k * tile_q + tile_q)
                          + B * ntq * (C * tile_q + tile_q))
    bytes_accessed = int(
        itemsize * (B * ntq * C * tile_q
                    + B * ntq * ntk * C * tile_k
                    + B * C * n_pad)
        + mm_size * (B * ntq * C * C
                     + (cq_pad + (cq_pad + C)) * C)
        + 4 * (2 * cq_pad + C))

    kernel = functools.partial(_self_attention_kernel,
                               mm_dtype=mm_dtype, cq_pad=cq_pad)

    out = pl.pallas_call(
        kernel,
        out_shape=jax.ShapeDtypeStruct((B, C, n_pad), x.dtype),
        grid=(B, ntq, ntk),
        in_specs=[
            pl.BlockSpec(memory_space=pltpu.MemorySpace.SMEM),           # gamma/delta
            pl.BlockSpec(memory_space=pltpu.MemorySpace.SMEM),           # true N
            pl.BlockSpec((1, C, tile_q), lambda b, qi, ki: (b, 0, qi)),  # x (query tile)
            pl.BlockSpec((1, C, tile_k), lambda b, qi, ki: (b, 0, ki)),  # x (key tile)
            pl.BlockSpec((1, C, C), lambda b, qi, ki: (b, 0, 0)),        # att_c^T
            pl.BlockSpec((cq_pad, C), lambda b, qi, ki: (0, 0)),         # Wq (padded)
            pl.BlockSpec((cq_pad, 1), lambda b, qi, ki: (0, 0)),         # bq (padded)
            pl.BlockSpec((cq_pad + C, C), lambda b, qi, ki: (0, 0)),     # Wkv (fused)
            pl.BlockSpec((cq_pad + C, 1), lambda b, qi, ki: (0, 0)),     # bkv (fused)
        ],
        out_specs=pl.BlockSpec((1, C, tile_q), lambda b, qi, ki: (b, 0, qi)),
        scratch_shapes=[
            pltpu.VMEM((cq_pad, tile_q), mm_dtype),  # query projection tile
            pltpu.VMEM((1, tile_q), jnp.float32),    # flash running max
            pltpu.VMEM((1, tile_q), jnp.float32),    # flash running denom
            pltpu.VMEM((C, tile_q), jnp.float32),    # flash output accumulator
        ],
        compiler_params=pltpu.CompilerParams(
            dimension_semantics=("parallel", "parallel", "arbitrary"),
            vmem_limit_bytes=vmem_limit),
        cost_estimate=pl.CostEstimate(flops=flops,
                                      transcendentals=transcendentals,
                                      bytes_accessed=bytes_accessed),
    )(gd, nv, x_flat, x_flat, att_ct, wq_p, bq_p, wkv, bkv)

    return out[:, :, :N].reshape(B, C, H, W)


def reference(x, wq, bq, wk, bk, wv, bv, gamma, delta):
    """Pure-JAX f32 mirror of the PyTorch forward, for verification."""
    B, C, H, W = x.shape
    N = H * W
    xf = x.reshape(B, C, N).astype(jnp.float32)

    # Channel attention
    energy_c = jnp.einsum('bcn,bdn->bcd', xf, xf)
    att_c = jax.nn.softmax(energy_c, axis=-1)
    c = jnp.einsum('bdc,bdn->bcn', att_c, xf)

    # Spatial attention
    q = jnp.einsum('qc,bcn->bqn', wq, xf) + bq[None, :, None]
    k = jnp.einsum('qc,bcn->bqn', wk, xf) + bk[None, :, None]
    v = jnp.einsum('vc,bcn->bvn', wv, xf) + bv[None, :, None]
    energy_s = jnp.einsum('bqn,bqm->bnm', q, k)
    att_s = jax.nn.softmax(energy_s, axis=-1)
    s = jnp.einsum('bcn,bmn->bcm', v, att_s)

    att = 1.0 + jax.nn.sigmoid(c * gamma * (s * delta))
    return (att * xf).reshape(B, C, H, W)


if __name__ == "__main__":
    # in_dim = 16 -> query/key channels = 2.  H = W = 15 -> N = 225, padded to
    # 256 inside the wrapper, so the (128, 128) config exercises the flash
    # accumulation over multiple key tiles AND the key-padding mask, while the
    # other configs exercise decoupled / large tiles.
    B, C, H, W = 2, 16, 15, 15
    Cq = C // 8

    key = jax.random.PRNGKey(0)
    kx, kwq, kbq, kwk, kbk, kwv, kbv = jax.random.split(key, 7)

    x = jax.random.normal(kx, (B, C, H, W), dtype=jnp.float32)
    wq = 0.1 * jax.random.normal(kwq, (Cq, C), dtype=jnp.float32)
    bq = 0.1 * jax.random.normal(kbq, (Cq,), dtype=jnp.float32)
    wk = 0.1 * jax.random.normal(kwk, (Cq, C), dtype=jnp.float32)
    bk = 0.1 * jax.random.normal(kbk, (Cq,), dtype=jnp.float32)
    wv = 0.1 * jax.random.normal(kwv, (C, C), dtype=jnp.float32)
    bv = 0.1 * jax.random.normal(kbv, (C,), dtype=jnp.float32)
    # PyTorch inits gamma/delta to 0 (gate == 1.5 exactly); use O(1) values so
    # both attention branches actually influence the output under test.
    gamma = jnp.float32(2.0)
    delta = jnp.float32(-1.5)

    ref = reference(x, wq, bq, wk, bk, wv, bv, gamma, delta)

    configs = [
        # f32 MXU path, multi-tile streaming + masking: tight structural check.
        dict(tile_q=128, tile_k=128, mm_dtype=jnp.float32, atol=2e-3),
        # bf16 fast path with decoupled query/key tiles.
        dict(tile_q=128, tile_k=256, mm_dtype=jnp.bfloat16, atol=1e-2),
        # bf16 fast path with the (clamped) large-tile defaults.
        dict(tile_q=256, tile_k=512, mm_dtype=jnp.bfloat16, atol=1e-2),
    ]
    for cfg in configs:
        cfg = dict(cfg)
        atol = cfg.pop("atol")
        out = jax.block_until_ready(
            self_attention(x, wq, bq, wk, bk, wv, bv, gamma, delta, **cfg))
        assert out.shape == (B, C, H, W)
        err = jnp.max(jnp.abs(out - ref))
        assert jnp.allclose(out, ref, atol=atol, rtol=atol), (
            f"{cfg} mismatch vs reference (max abs err {err})")

    print("KERNEL_OK")
</pallas_src>

<mosaic_0001>
module attributes {stable_mosaic.version = 11 : i64} {
  func.func @_self_attention_kernel(%arg0: i32, %arg1: i32, %arg2: i32, %arg3: memref<2xf32, #tpu.memory_space<smem>>, %arg4: memref<1xi32, #tpu.memory_space<smem>>, %arg5: memref<1x16x128xf32, #tpu.memory_space<vmem>>, %arg6: memref<1x16x128xf32, #tpu.memory_space<vmem>>, %arg7: memref<1x16x16xf32, #tpu.memory_space<vmem>>, %arg8: memref<8x16xf32, #tpu.memory_space<vmem>>, %arg9: memref<8x1xf32, #tpu.memory_space<vmem>>, %arg10: memref<24x16xf32, #tpu.memory_space<vmem>>, %arg11: memref<24x1xf32, #tpu.memory_space<vmem>>, %arg12: memref<1x16x128xf32, #tpu.memory_space<vmem>>, %arg13: memref<8x128xf32, #tpu.memory_space<vmem>>, %arg14: memref<1x128xf32, #tpu.memory_space<vmem>>, %arg15: memref<1x128xf32, #tpu.memory_space<vmem>>, %arg16: memref<16x128xf32, #tpu.memory_space<vmem>>) attributes {dimension_semantics = [#tpu.dimension_semantics<parallel>, #tpu.dimension_semantics<parallel>, #tpu.dimension_semantics<arbitrary>], iteration_bounds = array<i64: 2, 2, 2>, scalar_prefetch = 0 : i64, scratch_operands = 4 : i64, tpu.core_type = #tpu.core_type<tc>, window_params = [{transform_indices = @transform_0, window_bounds = array<i64: 2>}, {transform_indices = @transform_1, window_bounds = array<i64: 1>}, {transform_indices = @transform_2, window_bounds = array<i64: 1, 16, 128>}, {transform_indices = @transform_3, window_bounds = array<i64: 1, 16, 128>}, {transform_indices = @transform_4, window_bounds = array<i64: 1, 16, 16>}, {pipeline_mode = #tpu.pipeline_mode<synchronous>, transform_indices = @transform_5, window_bounds = array<i64: 8, 16>}, {pipeline_mode = #tpu.pipeline_mode<synchronous>, transform_indices = @transform_6, window_bounds = array<i64: 8, 1>}, {pipeline_mode = #tpu.pipeline_mode<synchronous>, transform_indices = @transform_7, window_bounds = array<i64: 24, 16>}, {pipeline_mode = #tpu.pipeline_mode<synchronous>, transform_indices = @transform_8, window_bounds = array<i64: 24, 1>}, {transform_indices = @transform_9, window_bounds = array<i64: 1, 16, 128>}]} {
    %c0 = arith.constant 0 : index
    %c0_0 = arith.constant 0 : index
    %c0_1 = arith.constant 0 : index
    %0 = vector.load %arg6[%c0, %c0_0, %c0_1] : memref<1x16x128xf32, #tpu.memory_space<vmem>>, vector<1x16x128xf32>
    %1 = vector.shape_cast %0 : vector<1x16x128xf32> to vector<16x128xf32>
    %c0_i32 = arith.constant 0 : i32
    %2 = arith.cmpi eq, %arg2, %c0_i32 : i32
    %3 = arith.extui %2 : i1 to i32
    %c0_i32_2 = arith.constant 0 : i32
    %4 = arith.cmpi ne, %3, %c0_i32_2 : i32
    scf.if %4 {
      %cst_29 = arith.constant -1.000000e+30 : f32
      %51 = vector.broadcast %cst_29 : f32 to vector<1x128xf32>
      %c0_30 = arith.constant 0 : index
      %c0_31 = arith.constant 0 : index
      %52 = vector.load %arg14[%c0_30, %c0_31] : memref<1x128xf32, #tpu.memory_space<vmem>>, vector<1x128xf32>
      tpu.vector_store %arg14[%c0_30, %c0_31], %51 {strides = array<i32>} : memref<1x128xf32, #tpu.memory_space<vmem>>, vector<1x128xf32>,
      %cst_32 = arith.constant 0.000000e+00 : f32
      %53 = vector.broadcast %cst_32 : f32 to vector<1x128xf32>
      %c0_33 = arith.constant 0 : index
      %c0_34 = arith.constant 0 : index
      %54 = vector.load %arg15[%c0_33, %c0_34] : memref<1x128xf32, #tpu.memory_space<vmem>>, vector<1x128xf32>
      tpu.vector_store %arg15[%c0_33, %c0_34], %53 {strides = array<i32>} : memref<1x128xf32, #tpu.memory_space<vmem>>, vector<1x128xf32>,
      %cst_35 = arith.constant 0.000000e+00 : f32
      %55 = vector.broadcast %cst_35 : f32 to vector<16x128xf32>
      %c0_36 = arith.constant 0 : index
      %c0_37 = arith.constant 0 : index
      %56 = vector.load %arg16[%c0_36, %c0_37] : memref<16x128xf32, #tpu.memory_space<vmem>>, vector<16x128xf32>
      tpu.vector_store %arg16[%c0_36, %c0_37], %55 {strides = array<i32>} : memref<16x128xf32, #tpu.memory_space<vmem>>, vector<16x128xf32>,
      %c0_38 = arith.constant 0 : index
      %c0_39 = arith.constant 0 : index
      %57 = vector.load %arg8[%c0_38, %c0_39] : memref<8x16xf32, #tpu.memory_space<vmem>>, vector<8x16xf32>
      %c0_40 = arith.constant 0 : index
      %c0_41 = arith.constant 0 : index
      %c0_42 = arith.constant 0 : index
      %58 = vector.load %arg5[%c0_40, %c0_41, %c0_42] : memref<1x16x128xf32, #tpu.memory_space<vmem>>, vector<1x16x128xf32>
      %59 = vector.shape_cast %58 : vector<1x16x128xf32> to vector<16x128xf32>
      %cst_43 = arith.constant dense<0.000000e+00> : vector<8x128xf32>
      %60 = tpu.matmul %57, %59, %cst_43 {dimension_numbers = #tpu.dot_dimension_numbers<[1], [0], [0], [1], [0, 0, 1, 1], [], []>} : vector<8x16xf32>, vector<16x128xf32>, vector<8x128xf32> -> vector<8x128xf32>
      %c0_44 = arith.constant 0 : index
      %c0_45 = arith.constant 0 : index
      %61 = vector.load %arg9[%c0_44, %c0_45] : memref<8x1xf32, #tpu.memory_space<vmem>>, vector<8x1xf32>
      %62 = vector.broadcast %61 : vector<8x1xf32> to vector<8x128xf32>
      %63 = arith.addf %60, %62 : vector<8x128xf32>
      %c0_46 = arith.constant 0 : index
      %c0_47 = arith.constant 0 : index
      %64 = vector.load %arg13[%c0_46, %c0_47] : memref<8x128xf32, #tpu.memory_space<vmem>>, vector<8x128xf32>
      tpu.vector_store %arg13[%c0_46, %c0_47], %63 {strides = array<i32>} : memref<8x128xf32, #tpu.memory_space<vmem>>, vector<8x128xf32>,
    } else {
    }
    %c0_3 = arith.constant 0 : index
    %c0_4 = arith.constant 0 : index
    %5 = vector.load %arg10[%c0_3, %c0_4] : memref<24x16xf32, #tpu.memory_space<vmem>>, vector<24x16xf32>
    %cst = arith.constant dense<0.000000e+00> : vector<24x128xf32>
    %6 = tpu.matmul %5, %1, %cst {dimension_numbers = #tpu.dot_dimension_numbers<[1], [0], [0], [1], [0, 0, 1, 1], [], []>} : vector<24x16xf32>, vector<16x128xf32>, vector<24x128xf32> -> vector<24x128xf32>
    %c0_5 = arith.constant 0 : index
    %c0_6 = arith.constant 0 : index
    %7 = vector.load %arg11[%c0_5, %c0_6] : memref<24x1xf32, #tpu.memory_space<vmem>>, vector<24x1xf32>
    %8 = vector.broadcast %7 : vector<24x1xf32> to vector<24x128xf32>
    %9 = arith.addf %6, %8 : vector<24x128xf32>
    %10 = vector.extract_strided_slice %9 {offsets = [0, 0], sizes = [8, 128], strides = [1, 1]} : vector<24x128xf32> to vector<8x128xf32>
    %11 = vector.extract_strided_slice %9 {offsets = [8, 0], sizes = [16, 128], strides = [1, 1]} : vector<24x128xf32> to vector<16x128xf32>
    %c0_7 = arith.constant 0 : index
    %c0_8 = arith.constant 0 : index
    %12 = vector.load %arg13[%c0_7, %c0_8] : memref<8x128xf32, #tpu.memory_space<vmem>>, vector<8x128xf32>
    %cst_9 = arith.constant dense<0.000000e+00> : vector<128x128xf32>
    %13 = tpu.matmul %10, %12, %cst_9 {dimension_numbers = #tpu.dot_dimension_numbers<[0], [0], [1], [1], [0, 1, 1, 1], [], []>} : vector<8x128xf32>, vector<8x128xf32>, vector<128x128xf32> -> vector<128x128xf32>
    %c128_i32 = arith.constant 128 : i32
    %14 = arith.muli %arg2, %c128_i32 : i32
    %15 = tpu.iota {dimensions = array<i32: 0>} : vector<128x1xi32>
    %16 = vector.broadcast %14 : i32 to vector<128x1xi32>
    %17 = arith.addi %16, %15 : vector<128x1xi32>
    %c0_10 = arith.constant 0 : index
    %18 = memref.load %arg4[%c0_10] : memref<1xi32, #tpu.memory_space<smem>>
    %19 = vector.broadcast %18 : i32 to vector<128x1xi32>
    %20 = arith.cmpi slt, %17, %19 : vector<128x1xi32>
    %cst_11 = arith.constant 0.000000e+00 : f32
    %cst_12 = arith.constant -1.000000e+30 : f32
    %21 = vector.broadcast %cst_11 : f32 to vector<128x1xf32>
    %22 = vector.broadcast %cst_12 : f32 to vector<128x1xf32>
    %23 = arith.select %20, %21, %22 : vector<128x1xi1>, vector<128x1xf32>
    %24 = vector.broadcast %23 : vector<128x1xf32> to vector<128x128xf32>
    %25 = arith.addf %13, %24 : vector<128x128xf32>
    %c0_13 = arith.constant 0 : index
    %c0_14 = arith.constant 0 : index
    %26 = vector.load %arg14[%c0_13, %c0_14] : memref<1x128xf32, #tpu.memory_space<vmem>>, vector<1x128xf32>
    %cst_15 = arith.constant dense<0xFF800000> : vector<128xf32>
    %27 = vector.multi_reduction <maximumf>, %25, %cst_15 [0] : vector<128x128xf32> to vector<128xf32>
    %28 = vector.shape_cast %27 : vector<128xf32> to vector<1x128xf32>
    %29 = arith.maximumf %26, %28 : vector<1x128xf32>
    %30 = arith.subf %26, %29 : vector<1x128xf32>
    %31 = math.exp %30 : vector<1x128xf32>
    %32 = vector.broadcast %29 : vector<1x128xf32> to vector<128x128xf32>
    %33 = arith.subf %25, %32 : vector<128x128xf32>
    %34 = math.exp %33 : vector<128x128xf32>
    %c0_16 = arith.constant 0 : index
    %c0_17 = arith.constant 0 : index
    %35 = vector.load %arg15[%c0_16, %c0_17] : memref<1x128xf32, #tpu.memory_space<vmem>>, vector<1x128xf32>
    %36 = arith.mulf %31, %35 : vector<1x128xf32>
    %cst_18 = arith.constant dense<0.000000e+00> : vector<128xf32>
    %37 = vector.multi_reduction <add>, %34, %cst_18 [0] : vector<128x128xf32> to vector<128xf32>
    %38 = vector.shape_cast %37 : vector<128xf32> to vector<1x128xf32>
    %39 = arith.addf %36, %38 : vector<1x128xf32>
    %c0_19 = arith.constant 0 : index
    %c0_20 = arith.constant 0 : index
    %40 = vector.load %arg15[%c0_19, %c0_20] : memref<1x128xf32, #tpu.memory_space<vmem>>, vector<1x128xf32>
    tpu.vector_store %arg15[%c0_19, %c0_20], %39 {strides = array<i32>} : memref<1x128xf32, #tpu.memory_space<vmem>>, vector<1x128xf32>,
    %c0_21 = arith.constant 0 : index
    %c0_22 = arith.constant 0 : index
    %41 = vector.load %arg16[%c0_21, %c0_22] : memref<16x128xf32, #tpu.memory_space<vmem>>, vector<16x128xf32>
    %42 = vector.broadcast %31 : vector<1x128xf32> to vector<16x128xf32>
    %43 = arith.mulf %42, %41 : vector<16x128xf32>
    %cst_23 = arith.constant dense<0.000000e+00> : vector<16x128xf32>
    %44 = tpu.matmul %11, %34, %cst_23 {dimension_numbers = #tpu.dot_dimension_numbers<[1], [0], [0], [1], [0, 0, 1, 1], [], []>} : vector<16x128xf32>, vector<128x128xf32>, vector<16x128xf32> -> vector<16x128xf32>
    %45 = arith.addf %43, %44 : vector<16x128xf32>
    %c0_24 = arith.constant 0 : index
    %c0_25 = arith.constant 0 : index
    %46 = vector.load %arg16[%c0_24, %c0_25] : memref<16x128xf32, #tpu.memory_space<vmem>>, vector<16x128xf32>
    tpu.vector_store %arg16[%c0_24, %c0_25], %45 {strides = array<i32>} : memref<16x128xf32, #tpu.memory_space<vmem>>, vector<16x128xf32>,
    %c0_26 = arith.constant 0 : index
    %c0_27 = arith.constant 0 : index
    %47 = vector.load %arg14[%c0_26, %c0_27] : memref<1x128xf32, #tpu.memory_space<vmem>>, vector<1x128xf32>
    tpu.vector_store %arg14[%c0_26, %c0_27], %29 {strides = array<i32>} : memref<1x128xf32, #tpu.memory_space<vmem>>, vector<1x128xf32>,
    %c1_i32 = arith.constant 1 : i32
    %48 = arith.cmpi eq, %arg2, %c1_i32 : i32
    %49 = arith.extui %48 : i1 to i32
    %c0_i32_28 = arith.constant 0 : i32
    %50 = arith.cmpi ne, %49, %c0_i32_28 : i32
    scf.if %50 {
      %c0_29 = arith.constant 0 : index
      %c0_30 = arith.constant 0 : index
      %c0_31 = arith.constant 0 : index
      %51 = vector.load %arg5[%c0_29, %c0_30, %c0_31] : memref<1x16x128xf32, #tpu.memory_space<vmem>>, vector<1x16x128xf32>
      %52 = vector.shape_cast %51 : vector<1x16x128xf32> to vector<16x128xf32>
      %c0_32 = arith.constant 0 : index
      %c0_33 = arith.constant 0 : index
      %c0_34 = arith.constant 0 : index
      %53 = vector.load %arg7[%c0_32, %c0_33, %c0_34] : memref<1x16x16xf32, #tpu.memory_space<vmem>>, vector<1x16x16xf32>
      %54 = vector.shape_cast %53 : vector<1x16x16xf32> to vector<16x16xf32>
      %cst_35 = arith.constant dense<0.000000e+00> : vector<16x128xf32>
      %55 = tpu.matmul %54, %52, %cst_35 {dimension_numbers = #tpu.dot_dimension_numbers<[1], [0], [0], [1], [0, 0, 1, 1], [], []>} : vector<16x16xf32>, vector<16x128xf32>, vector<16x128xf32> -> vector<16x128xf32>
      %c0_36 = arith.constant 0 : index
      %c0_37 = arith.constant 0 : index
      %56 = vector.load %arg16[%c0_36, %c0_37] : memref<16x128xf32, #tpu.memory_space<vmem>>, vector<16x128xf32>
      %c0_38 = arith.constant 0 : index
      %c0_39 = arith.constant 0 : index
      %57 = vector.load %arg15[%c0_38, %c0_39] : memref<1x128xf32, #tpu.memory_space<vmem>>, vector<1x128xf32>
      %58 = tpu.reciprocal %57 {approx = true} : vector<1x128xf32> -> vector<1x128xf32>
      %59 = vector.broadcast %58 : vector<1x128xf32> to vector<16x128xf32>
      %60 = arith.mulf %56, %59 : vector<16x128xf32>
      %c0_40 = arith.constant 0 : index
      %61 = memref.load %arg3[%c0_40] : memref<2xf32, #tpu.memory_space<smem>>
      %c1 = arith.constant 1 : index
      %62 = memref.load %arg3[%c1] : memref<2xf32, #tpu.memory_space<smem>>
      %63 = vector.broadcast %61 : f32 to vector<16x128xf32>
      %64 = arith.mulf %55, %63 : vector<16x128xf32>
      %65 = vector.broadcast %62 : f32 to vector<16x128xf32>
      %66 = arith.mulf %60, %65 : vector<16x128xf32>
      %67 = arith.mulf %64, %66 : vector<16x128xf32>
      %68 = arith.negf %67 : vector<16x128xf32>
      %69 = math.exp %68 : vector<16x128xf32>
      %cst_41 = arith.constant 1.000000e+00 : f32
      %70 = vector.broadcast %cst_41 : f32 to vector<16x128xf32>
      %71 = arith.addf %70, %69 : vector<16x128xf32>
      %72 = arith.divf %70, %71 : vector<16x128xf32>
      %cst_42 = arith.constant 1.000000e+00 : f32
      %73 = vector.broadcast %cst_42 : f32 to vector<16x128xf32>
      %74 = arith.addf %73, %72 : vector<16x128xf32>
      %75 = arith.mulf %74, %52 : vector<16x128xf32>
      %c0_43 = arith.constant 0 : index
      %c0_44 = arith.constant 0 : index
      %c0_45 = arith.constant 0 : index
      %76 = vector.load %arg12[%c0_43, %c0_44, %c0_45] : memref<1x16x128xf32, #tpu.memory_space<vmem>>, vector<1x16x128xf32>
      %77 = vector.shape_cast %76 : vector<1x16x128xf32> to vector<16x128xf32>
      %78 = vector.shape_cast %75 : vector<16x128xf32> to vector<1x16x128xf32>
      tpu.vector_store %arg12[%c0_43, %c0_44, %c0_45], %78 {strides = array<i32>} : memref<1x16x128xf32, #tpu.memory_space<vmem>>, vector<1x16x128xf32>,
    } else {
    }
    return
  }
  func.func @transform_0(%arg0: i32, %arg1: i32, %arg2: i32) -> i32 {
    %c0_i32 = arith.constant 0 : i32
    %c0_i32_0 = arith.constant 0 : i32
    return %c0_i32 : i32
  }
  func.func @transform_1(%arg0: i32, %arg1: i32, %arg2: i32) -> i32 {
    %c0_i32 = arith.constant 0 : i32
    %c0_i32_0 = arith.constant 0 : i32
    return %c0_i32 : i32
  }
  func.func @transform_2(%arg0: i32, %arg1: i32, %arg2: i32) -> (i32, i32, i32) {
    %c0_i32 = arith.constant 0 : i32
    %c0_i32_0 = arith.constant 0 : i32
    return %arg0, %c0_i32, %arg1 : i32, i32, i32
  }
  func.func @transform_3(%arg0: i32, %arg1: i32, %arg2: i32) -> (i32, i32, i32) {
    %c0_i32 = arith.constant 0 : i32
    %c0_i32_0 = arith.constant 0 : i32
    return %arg0, %c0_i32, %arg2 : i32, i32, i32
  }
  func.func @transform_4(%arg0: i32, %arg1: i32, %arg2: i32) -> (i32, i32, i32) {
    %c0_i32 = arith.constant 0 : i32
    %c0_i32_0 = arith.constant 0 : i32
    %c0_i32_1 = arith.constant 0 : i32
    return %arg0, %c0_i32, %c0_i32_0 : i32, i32, i32
  }
  func.func @transform_5(%arg0: i32, %arg1: i32, %arg2: i32) -> (i32, i32) {
    %c0_i32 = arith.constant 0 : i32
    %c0_i32_0 = arith.constant 0 : i32
    %c0_i32_1 = arith.constant 0 : i32
    return %c0_i32, %c0_i32_0 : i32, i32
  }
  func.func @transform_6(%arg0: i32, %arg1: i32, %arg2: i32) -> (i32, i32) {
    %c0_i32 = arith.constant 0 : i32
    %c0_i32_0 = arith.constant 0 : i32
    %c0_i32_1 = arith.constant 0 : i32
    return %c0_i32, %c0_i32_0 : i32, i32
  }
  func.func @transform_7(%arg0: i32, %arg1: i32, %arg2: i32) -> (i32, i32) {
    %c0_i32 = arith.constant 0 : i32
    %c0_i32_0 = arith.constant 0 : i32
    %c0_i32_1 = arith.constant 0 : i32
    return %c0_i32, %c0_i32_0 : i32, i32
  }
  func.func @transform_8(%arg0: i32, %arg1: i32, %arg2: i32) -> (i32, i32) {
    %c0_i32 = arith.constant 0 : i32
    %c0_i32_0 = arith.constant 0 : i32
    %c0_i32_1 = arith.constant 0 : i32
    return %c0_i32, %c0_i32_0 : i32, i32
  }
  func.func @transform_9(%arg0: i32, %arg1: i32, %arg2: i32) -> (i32, i32, i32) {
    %c0_i32 = arith.constant 0 : i32
    %c0_i32_0 = arith.constant 0 : i32
    return %arg0, %c0_i32, %arg1 : i32, i32, i32
  }
}

</mosaic_0001>

<bundles_post_ra>
// kernel: tpu_custom_call.1
= control target key start
LH: loop header
LB: loop body
LE: loop exit
PB: predicated region body
PF: predicated region fallthrough
CT: control target
= control target key end

     0   :  { %s2812_s0 = inlined_call_operand.vmem [shape: f32[2], index: 0, kind: input, shape index: {}]   ;;  %s2813_s1 = inlined_call_operand.<no memory space> [shape: s32[1], index: 1, kind: input, shape index: {}]   ;;  %s2814_s2 = inlined_call_operand.vmem [shape: f32[2,16,256], index: 2, kind: input, shape index: {}]   ;;  %s2815_s3 = inlined_call_operand.hbm [shape: f32[2,16,256], index: 3, kind: input, shape index: {}]   ;;  %s2816_s4 = inlined_call_operand.hbm [shape: f32[2,16,16], index: 4, kind: input, shape index: {}]   ;;  %s2817_s5 = inlined_call_operand.hbm [shape: f32[8,16], index: 5, kind: input, shape index: {}]   ;;  %s2818_s6 = inlined_call_operand.vmem [shape: f32[8,1], index: 6, kind: input, shape index: {}]   ;;  %s2819_s7 = inlined_call_operand.vmem [shape: f32[24,16], index: 7, kind: input, shape index: {}]   ;;  %s2820_s8 = inlined_call_operand.vmem [shape: f32[24,1], index: 8, kind: input, shape index: {}]   ;;  %s2821_s9 = inlined_call_operand.hbm [shape: f32[2,16,256], index: 9, kind: output, shape index: {}]  }
   0x1   :  { %2846 = sst [smem:[#allocation39_spill]] %s2812_s0 }
   0x2   :  { %2847 = sst [smem:[#allocation40_spill]] %s2814_s2 }
   0x3   :  { %2848 = sst [smem:[#allocation41_spill]] %s2815_s3 }
   0x4   :  { %2849 = sst [smem:[#allocation42_spill]] %s2817_s5 }
   0x5   :  { %2850 = sst [smem:[#allocation43_spill]] %s2818_s6 }
   0x6   :  { %2851 = sst [smem:[#allocation44_spill]] %s2819_s7 }
   0x7   :  { %2852 = sst [smem:[#allocation45_spill]] %s2820_s8 }
   0x8   :  { %2853 = sst [smem:[#allocation46_spill]] %s2821_s9 }
   0x9   :  { %14 = sst [smem:[#allocation6]] %s2813_s1 }
   0xa   :  { %15 = vsyncpa [#allocation10], 0 }
   0xb   :  { %16 = vsyncpa [#allocation8], 0 }
   0xc   :  { %18 = vsyncpa [#allocation8 + $0x1], 0 }
   0xd   :  { %19 = vsyncpa [#allocation14], 0 }
   0xe   :  { %21 = vsyncpa [#allocation14 + $0x1], 0 }
   0xf   :  { %22 = vsyncpa [#allocation9], 0 }
  0x10   :  { %24 = vsyncpa [#allocation9 + $0x1], 0  ;;  %s2254_s11 = smov 0   ;;  %s2256_s12 = smov 0  }
  0x11   :  { %s2258_s13 = smov 0   ;;  %s2260_s14 = smov 0  }
  0x12   :  { %s2262_s15 = smov 0   ;;  %s2264_s16 = smov 0  }
  0x13   :  { %s2266_s1 = smov 0   ;;  %s2268_s17 = smov 0  }
  0x14   :  { %s2270_s18 = smov 0   ;;  %s2272_s19 = smov 0  }
  0x15   :  { %s2274_s20 = smov 0   ;;  %s2276_s21 = smov 0  }
  0x16   :  { %s2278_s22 = smov 0   ;;  %s2280_s23 = smov 0  }
  0x17   :  { %s2282_s24 = smov 0   ;;  %s2284_s25 = smov 0  }
  0x18 LB: > { %2854 = sst [smem:[#allocation22_spill]] %s2120_s11  ;;  %s2335_s26 = sadd.s32 4294967295, %s2180_s25   ;;  %s2180_s25 = sphi %s2284_s25, %s30_s25   ;;  %s2176_s24 = sphi %s2282_s24, %s2934_s24   ;;  %s2172_s23 = sphi %s2280_s23, %s2924_s23   ;;  %s2168_s22 = sphi %s2278_s22, %s2923_s22   ;;  %s2164_s21 = sphi %s2276_s21, %s2933_s21   ;;  %s2160_s20 = sphi %s2274_s20, %s2922_s20   ;;  %s2156_s19 = sphi %s2272_s19, %s2921_s19   ;;  %s2152_s18 = sphi %s2270_s18, %s2920_s18   ;;  %s2148_s17 = sphi %s2268_s17, %s2932_s17   ;;  %s2144_s1 = sphi %s2266_s1, %s2918_s1   ;;  %s2140_s16 = sphi %s2264_s16, %s2917_s16   ;;  %s2136_s15 = sphi %s2262_s15, %s2931_s15   ;;  %s2132_s14 = sphi %s2260_s14, %s2930_s14   ;;  %s2128_s13 = sphi %s2258_s13, %s2929_s13   ;;  %s2124_s12 = sphi %s2256_s12, %s2928_s12   ;;  %s2120_s11 = sphi %s2254_s11, %s2926_s11  }
  0x19   : > { %2855 = sst [smem:[#allocation23_spill]] %s2140_s16  ;;  %s42_s28 = sadd.s32 1, %s2168_s22 }
  0x1a   : > { %2856 = sst [smem:[#allocation24_spill]] %s2144_s1  ;;  %s45_s29 = sadd.s32 1, %s2172_s23 }
  0x1b   : > { %2857 = sst [smem:[#allocation25_spill]] %s2152_s18  ;;  %p43_p0 = scmp.ge.s32.totalorder %s42_s28, 2 }
  0x1c   : > { %2858 = sst [smem:[#allocation26_spill]] %s2156_s19  ;;  %s49_s30 = sadd.s32 1, %s2176_s24 }
  0x1d   : > { %2859 = sst [smem:[#allocation27_spill]] %s2160_s20  ;;  %p2832_p1 = scmp.ne.s32.totalorder %s2152_s18, %s2148_s17 }
  0x1e   : > { %2860 = sst [smem:[#allocation28_spill]] %s2164_s21  ;;  %s2936_s28 = smov (%p43_p0, %s42_s28), 0 }
  0x1f   : > { %2861 = sst [smem:[#allocation29_spill]] %s2168_s22  ;;  %s2938_s29 = smov (!%p43_p0, %s45_s29), %s2172_s23 }
  0x20   : > { %2862 = sst [smem:[#allocation30_spill]] %s2172_s23  ;;  %p108_p2 = scmp.eq.s32.totalorder %s2180_s25, 0 }
  0x21   : > { %2863 = sst [smem:[#allocation31_spill]] %s2936_s28  ;;  %s124_s27 = ssub.s32 %s2168_s22, %s2936_s28 }
  0x22   : > { %p47_p3 = scmp.ge.s32.totalorder %s2938_s29, 2  ;;  %s128_s9 = sadd.s32 1, %s2144_s1 }
  0x23   : > { %p2356_p4 = por %p108_p2, %p2832_p1  ;;  %p135_p5 = scmp.ne.s32.totalorder %s2144_s1, %s2140_s16 }
  0x24   : > { %s2940_s29 = smov (%p47_p3, %s2938_s29), 0  ;;  %s2942_s30 = smov (!%p47_p3, %s49_s30), %s2176_s24 }
  0x25   : > { %s2864_s10 = scalar_select %p2356_p4, 1, 0 }
  0x26   : > { %2865 = sst [smem:[#allocation32_spill]] %s2940_s29  ;;  %s96_s20 = ssub.s32 %s2172_s23, %s2940_s29 }
  0x27   : > { %p2369_p6 = por %p135_p5, %p108_p2  ;;  %p51_p7 = scmp.ge.s32.totalorder %s2942_s30, 2 }
  0x28   : > { %p141_p8 = scmp.ne.s32.totalorder %s2140_s16, %s2136_s15  ;;  %p2837_p9 = scmp.eq.s32.totalorder %s2335_s26, 0 }
  0x29   : > { %s2866_s28 = scalar_select %p2369_p6, 1, 0 }
  0x2a   : > { %s154_s21 = sadd.s32 1, %s2132_s14  ;;  %s2944_s30 = smov (%p51_p7, %s2942_s30), 0 }
  0x2b   : > { %2867 = sst [smem:[#allocation33_spill]] %s2944_s30  ;;  %p2381_p10 = por %p2837_p9, %p141_p8 }
  0x2c   : > { %p161_p11 = scmp.ne.s32.totalorder %s2132_s14, %s2128_s13  ;;  %s95_s15 = ssub.s32 %s2176_s24, %s2944_s30 }
  0x2d   : > { %s2868_s29 = scalar_select %p2381_p10, 1, 0 }
  0x2e   : > { %p167_p12 = scmp.ne.s32.totalorder %s2128_s13, %s2124_s12  ;;  %s97_s7 = sor.u32 %s96_s20, %s95_s15 }
  0x2f   : > { %2869 = sst [smem:[#allocation34_spill]] %s2868_s29  ;;  %s125_s8 = sor.u32 %s124_s27, %s95_s15 }
  0x30   : > { %p98_p13 = scmp.eq.s32.totalorder %s97_s7, 0  ;;  %p126_p0 = scmp.eq.s32.totalorder %s125_s8, 0 }
  0x31   : > { %p152_p3 = scmp.eq.s32.totalorder %s95_s15, 0  ;;  %p2393_p5 = por %p161_p11, %p108_p2 }
  0x32   : > { %s2871_s19 = sadd.s32 1, %s2152_s18  ;;  %p2410_p7 = por %p167_p12, %p2837_p9 }
  0x33   : > { %s2870_s6 = scalar_select %p2393_p5, 1, 0 }
  0x34   : > { %s2400_s29 = scalar_select %p98_p13, %s2152_s18, %s2871_s19  }
  0x35   : > { %s2403_s16 = scalar_select %p126_p0, %s2144_s1, %s128_s9  }
  0x36   : > { %2872 = sst [smem:[#allocation35_spill]] %s2400_s29  ;;  %p277_p8 = scmp.eq.s32.totalorder %s2335_s26, 7 }
  0x37   : > { %2873 = sst [smem:[#allocation36_spill]] %s2403_s16  ;;  %p282_p1 = scmp.ne.s32.totalorder %s2148_s17, %s2120_s11 }
  0x38   : > { %s2406_s30 = scalar_select %p152_p3, %s2132_s14, %s154_s21  }
  0x39   : > { %s2875_s12 = scalar_select %p2410_p7, 1, 0 }
  0x3a   : > { %2874 = sst [smem:[#allocation37_spill]] %s2406_s30  ;;  %s2876_s7 = sadd.s32 4294967294, %s2180_s25  }
  0x3b   : > { %p283_p2 = scmp.eq.s32.totalorder %s2876_s7, 7  ;;  %p2877_p11 = scmp.ne.s32.totalorder %s2152_s18, %s2148_s17 }
  0x3c   : > { %p1505_p13 = scmp.ge.s32.totalorder %s2180_s25, 1  ;;  %p290_p3 = scmp.lt.s32.totalorder %s2180_s25, 9 }
  0x3d   : > { %p2422_p10 = por %p277_p8, %p2877_p11  ;;  %p2427_p0 = por %p283_p2, %p282_p1 }
  0x3e   : > { %p2432_p5 = pnand %p1505_p13, %p290_p3  ;;  %s2882_s0 = sld [smem:[#allocation39_spill]] }
  0x3f   : > { %s2878_s8 = scalar_select %p2422_p10, 1, 0 }
  0x40   : > { %s2879_s9 = scalar_select %p2427_p0, 1, 0 }
  0x41   : > { %s2881_s19 = scalar_select %p2432_p5, 1, 0 }
  0x42   : > { %2880 = sst [smem:[#allocation38_spill]] %s2879_s9  ;;  %p1708_p12 = pneg %p2432_p5 }
  0x43   : > { %s2182_s15 = smov [#allocation15]  }
  0x44   : > { %s303_s27 = sshll.u32 %s2882_s0, 4  ;;  %s317_s7 = sshll.u32 %s2182_s15, 4  ;;  %s304_s27 = int_to_ptr.vmem [resolvable:$true] %s303_s27  ;;  %s318_s7 = int_to_ptr.vmem [resolvable:$true] %s317_s7 }
  0x45   : > { %p2443_p1 = pnand %p1708_p12, %p2837_p9  ;;  %s1915_s16 = scalar_lea.vmem %s304_s27, 16 }
  0x46   : > { %p1916_p8 = scmp.ne.s32.totalorder %s304_s27, %s1915_s16  ;;  %p1923_p3 = scmp.lt.s32.totalorder %s304_s27, %s304_s27 }
  0x47   : > { %p1917_p2 = pneg %p2443_p1  ;;  %p1924_p0 = scmp.lt.s32.totalorder %s1915_s16, %s1915_s16 }
  0x49   : > { %p1918_p11 = pnand %p1917_p2, %p1916_p8  ;;  %p1925_p10 = por %p1924_p0, %p1923_p3 }
  0x4b   : > { %p1919_p13 = pneg %p1918_p11 }
  0x4d   : > { %p1926_p7 = pnand %p1925_p10, %p1919_p13 }
  0x4f   : > { %1929 = shalt.err (!%p1926_p7)
}
  0x50   : > { %s2183_s20 = smov [#allocation7]   ;;  %s1941_s21 = scalar_lea.vmem %s318_s7, 128 }
  0x51   : > { %1711 = dma.vmem_to_smem (!%p2443_p1), %s304_s27, 16, %s2183_s20, [#allocation10]  }
  0x52   : > { %p1942_p12 = scmp.ne.s32.totalorder %s318_s7, %s1941_s21  ;;  %p1949_p6 = scmp.lt.s32.totalorder %s318_s7, %s318_s7 }
  0x53   : > { %p1950_p4 = scmp.lt.s32.totalorder %s1941_s21, %s1941_s21 }
  0x54   : > { %p1944_p9 = pnand %p1942_p12, %p1917_p2 }
  0x55   : > { %p1951_p8 = por %p1950_p4, %p1949_p6 }
  0x56   : > { %p1945_p5 = pneg %p1944_p9 }
  0x58   : > { %p1952_p11 = pnand %p1951_p8, %p1945_p5 }
  0x5a   : > { %1955 = shalt.err (!%p1952_p11)
}
  0x5b   : > { %s2884_s5 = sld [smem:[#allocation42_spill]]  ;;  %p1508_p10 = scmp.ge.s32.totalorder %s2180_s25, 8 }
  0x5c   : > { %p2885_p7 = scmp.ne.s32.totalorder (!%p1508_p10), %s2864_s10, 0 }
  0x5d   : > { %333 = sbr.rel (%p1508_p10) target bundleno = 144 (0x90), region = 40 }
  0x61   : > { %1714 = dma.hbm_to_vmem [thread:$0]  (!%p2443_p1), %s2884_s5, 128, %s318_s7, [#allocation14]  }
  0x62   : > { %336 = sbr.rel (!%p2885_p7) target bundleno = 109 (0x6d), region = 44  ;;  %s338_s27 = sand.u32 (%p2885_p7), 1, %s2152_s18  }
  0x63   : > { %s1510_s20 = sshll.u32 (%p2885_p7), %s2176_s24, 2  ;;  %s1509_s21 = sshll.u32 (%p2885_p7), %s338_s27, 4 }
  0x64   : > { %s342_s0 = sadd.s32 (%p2885_p7), %s2172_s23, %s1510_s20  ;;  %s2886_s2 = sld [smem:[#allocation40_spill]] (%p2885_p7) }
  0x65   : > { %s1511_s30 = sshll.u32 (%p2885_p7), %s342_s0, 3  ;;  %s340_s7 = scalar_lea.vmem (%p2885_p7), [#allocation11], %s1509_s21 }
  0x6a   : > { %s344_s11 = scalar_lea.vmem %s2886_s2, %s1511_s30 }
  0x6b   : > { %v375_v0 = vld [vmem:[%s344_s11] sm:$0xff]  ;;  %v377_v1 = vld [vmem:[%s344_s11 + $0x10] sm:$0xff] }
  0x6c   : > { %376 = vst [vmem:[%s340_s7] sm:$0xff] %v375_v0  ;;  %378 = vst [vmem:[%s340_s7 + $0x8] sm:$0xff] %v377_v1 }
  0x6d PF: > { %s385_s10 = sand.u32 1, %s2144_s1   ;;  %s1513_s15 = sshll.u32 %s2176_s24, 2 }
  0x6e   : > { %s1512_s16 = sshll.u32 %s385_s10, 4  ;;  %s394_s27 = sadd.s32 %s2168_s22, %s1513_s15 }
  0x6f   : > { %s1514_s0 = sshll.u32 %s394_s27, 7  ;;  %s389_s20 = scalar_lea.vmem [#allocation12], %s1512_s16 }
  0x70   : > { %s397_s5 = sshll.u32 %s389_s20, 4  ;;  %s2887_s3 = sld [smem:[#allocation41_spill]]  ;;  %s398_s5 = int_to_ptr.vmem [resolvable:$true] %s397_s5 }
  0x71   : > { %s407_s21 = sand.u32 1, %s2180_s25   ;;  %s386_s29 = scalar_lea.sflag [#allocation8], %s385_s10 }
  0x72   : > { %s1968_s7 = scalar_lea.vmem %s398_s5, 256  ;;  %p2888_p6 = scmp.ne.s32.totalorder %s2866_s28, 0 }
  0x73   : > { %p1969_p4 = scmp.ne.s32.totalorder %s398_s5, %s1968_s7  ;;  %s2184_s2 = smov [#allocation12]  }
  0x74   : > { %s1972_s23 = sshll.u32 %s2184_s2, 4  ;;  %s1973_s23 = int_to_ptr.vmem [resolvable:$false] %s1972_s23 }
  0x75   : > { %p1970_p9 = pnand %p1969_p4, %p2888_p6  ;;  %s1974_s18 = scalar_lea.vmem %s1973_s23, 512 }
  0x76   : > { %s396_s11 = scalar_lea.hbm %s2887_s3, %s1514_s0  ;;  %p1975_p0 = scmp.lt.s32.totalorder %s398_s5, %s1973_s23 }
  0x77   : > { %p1971_p5 = pneg %p1970_p9  ;;  %p1976_p1 = scmp.lt.s32.totalorder %s1974_s18, %s1968_s7 }
  0x79   : > { %p1977_p2 = por %p1976_p1, %p1975_p0 }
  0x7b   : > { %p1978_p13 = pnand %p1977_p2, %p1971_p5 }
  0x7d   : > { %1981 = shalt.err (!%p1978_p13)
}
  0x7e   : > { %s2185_s15 = smov 256   ;;  %s2186_s10 = smov 128  }
  0x7f   : > { %s2187_s16 = smov 8   ;;  %s409_s27 = sand.u32 1, %s2132_s14  }
  0x80   : > { %1698 = dma.hbm_to_vmem [thread:$0]  (%p2888_p6), %s396_s11, 256, %s398_s5, %s386_s29, %s2185_s15, %s2186_s10, %s2187_s16  }
  0x81   : > { %s1515_s0 = sshll.u32 %s409_s27, 4  ;;  %s1558_s20 = sshll.u32 %s2176_s24, 8 }
  0x82   : > { %s417_s23 = scalar_lea.hbm %s2816_s4, %s1558_s20  ;;  %s411_s18 = scalar_lea.vmem [#allocation13], %s1515_s0 }
  0x83   : > { %s418_s30 = sshll.u32 %s411_s18, 4  ;;  %s408_s7 = scalar_lea.sflag [#allocation14], %s407_s21  ;;  %s419_s30 = int_to_ptr.vmem [resolvable:$true] %s418_s30 }
  0x84   : > { %s1994_s3 = scalar_lea.vmem %s419_s30, 256  ;;  %p2889_p12 = scmp.ne.s32.totalorder %s2870_s6, 0 }
  0x85   : > { %p1995_p3 = scmp.ne.s32.totalorder %s419_s30, %s1994_s3  ;;  %s2188_s22 = smov [#allocation13]  }
  0x86   : > { %s1998_s1 = sshll.u32 %s2188_s22, 4  ;;  %s1999_s1 = int_to_ptr.vmem [resolvable:$false] %s1998_s1 }
  0x87   : > { %p1996_p8 = pnand %p1995_p3, %p2889_p12  ;;  %s2000_s5 = scalar_lea.vmem %s1999_s1, 512 }
  0x88   : > { %p2001_p10 = scmp.lt.s32.totalorder %s419_s30, %s1999_s1  ;;  %p2002_p7 = scmp.lt.s32.totalorder %s2000_s5, %s1994_s3 }
  0x89   : > { %p1997_p11 = pneg %p1996_p8 }
  0x8a   : > { %p2003_p4 = por %p2002_p7, %p2001_p10 }
  0x8c   : > { %p2004_p6 = pnand %p2003_p4, %p1997_p11 }
  0x8e   : > { %2007 = shalt.err (!%p2004_p6)
}
  0x8f   : > { %1699 = dma.hbm_to_vmem [thread:$0]  (%p2889_p12), %s417_s23, 256, %s419_s30, %s408_s7, %s2186_s10, %s2186_s10, %s2187_s16  }
  0x90 PF: > { %p2890_p9 = scmp.ne.s32.totalorder %s2881_s19, 0 }
  0x91   : > { %p2891_p5 = scmp.eq.s32.totalorder (!%p2890_p9), %s2335_s26, 0 }
  0x92   : > { %430 = sbr.rel (%p2890_p9) target bundleno = 1513 (0x5e9), region = 90 }
  0x97   : > { %2099 = dma.done.wait (%p2891_p5), [#allocation10], 16   ;;  %p2892_p0 = pmov %p2891_p5 }
  0x98   : > { %s2893_s22 = sld [smem:[#allocation23_spill]]  ;;  %s437_s1 = sand.u32 1, %s2148_s17  }
  0x99   : > { %2101 = vsyncadd (%p2892_p0), [#allocation10], 4294967280  ;;  %s2894_s3 = sld [smem:[#allocation34_spill]]  ;;  %s1520_s11 = sshll.u32 %s437_s1, 4 }
  0x9a   : > { %s2495_s21 = scalar_lea.vmem [#allocation11], %s1520_s11 }
  0x9e   : > { %s443_s28 = sand.u32 1, %s2893_s22  }
  0x9f   : > { %s1521_s6 = sshll.u32 %s443_s28, 4  ;;  %s444_s29 = scalar_lea.sflag [#allocation8], %s443_s28 }
  0xa0   : > { %s447_s19 = scalar_lea.vmem [#allocation12], %s1521_s6  ;;  %p2895_p1 = scmp.ne.s32.totalorder %s2894_s3, 0 }
  0xa2   : > { %2103 = dma.done.wait (%p2895_p1), %s444_s29, 256  }
  0xa3   : > { %2105 = vsyncadd (%p2895_p1), %s444_s29, 4294967040  ;;  %s452_s15 = sand.u32 1, %s2335_s26   ;;  %s454_s10 = sand.u32 1, %s2128_s13  }
  0xa4   : > { %s2503_s16 = sshll.u32 %s454_s10, 4  ;;  %s453_s27 = scalar_lea.sflag [#allocation14], %s452_s15 }
  0xa5   : > { %s456_s0 = scalar_lea.vmem [#allocation13], %s2503_s16  ;;  %p2896_p2 = scmp.ne.s32.totalorder %s2875_s12, 0 }
  0xa7   : > { %2107 = dma.done.wait (%p2896_p2), %s453_s27, 256  }
  0xa8   : > { %2109 = vsyncadd (%p2896_p2), %s453_s27, 4294967040  ;;  %p2897_p13 = pmov %p2892_p0 }
  0xa9   : > { %p2898_p3 = pmov %p2892_p0 }
  0xaa   : > { %2111 = dma.done.wait (%p2897_p13), [#allocation14], 128  }
  0xab   : > { %2113 = vsyncadd (%p2898_p3), [#allocation14], 4294967168 }
  0xac   : > { %465 = sfence }
  0xad   : > { %v505_v2 = vld [vmem:[%s447_s19] sm:$0xff]  ;;  %v506_v3 = vld [vmem:[%s447_s19 + $0x8] sm:$0xff]  ;;  %s2514_s20 = scalar_lea.vmem [#allocation16], %s1520_s11  ;;  %s2899_s2 = sld [smem:[#allocation26_spill]] }
  0xb3   : > { %p1525_p12 = scmp.ne.s32.totalorder %s2899_s2, 0 }
  0xb4   : > { %s2900_s9 = sld [smem:[#allocation43_spill]] (!%p1525_p12) }
  0xb5   : > { %510 = sbr.rel (%p1525_p12) target bundleno = 387 (0x183), region = 114 }
  0xba   : > { %v517_v4 = vld [vmem:[%s2495_s21 + $0x8] sm:$0xff]  ;;  %v2189_v5 = vmov -1e+30   ;;  %v2190_v6 = vmov 0.0   ;;  %v516_v7 = vld [vmem:[%s2495_s21] sm:$0xff]  ;;  %vm2191_vm0 = vmmov 0  }
  0xbb   : > { %511 = vst [vmem:[#allocation3] sm:$0x1] %v2189_v5  ;;  %512 = vst [vmem:[#allocation4] sm:$0x1] %v2190_v6  ;;  %1606 = vmatprep.subr.mxu0 %v2190_v6  ;;  %1610 = vmatprep.mubr.msk.f32.mxu0 %vm2191_vm0, %v2190_v6  ;;  %v518_v8 = vld [vmem:[%s2900_s9] sm:$0xff]  ;;  %vm524_vm1 = vcmask 130048  }
  0xbc   : > { %513 = vst [vmem:[#allocation5] sm:$0xff] %v2190_v6  ;;  %514 = vst [vmem:[#allocation5 + $0x8] sm:$0xff] %v2190_v6  ;;  %1607 = vmatpush3.msra.mxu0 %v517_v4  ;;  %v515_v9 = vld [vmem:[#allocation15] sm:$0xff]  ;;  %v2192_v10 = vmov 0  }
  0xbd   : > { %1868 = vset.pattern.permute.xlu0 %v2192_v10  ;;  %1608 = vmatprep.subr.mxu0 %v2190_v6 }
  0xbe   : > { %521 = vperm.xlu0 %1868, %v518_v8   ;;  %1609 = vmatpush3.msra.mxu0 %v516_v7 }
  0xbf   : > { %1611 = vmatmul.mubr.msk.f32.vlgmr.msra.gmra.mxu0 %vm524_vm1, %v515_v9 }
 0x139   : > { %v522_v11 = vpop.permute.xlu0 %521 }
 0x17f   : > { %v594_v12 = vpop.f32.mrf.mxu0 }
 0x180   : > { %v595_v13 = vadd.f32 %v594_v12, %v522_v11 }
 0x181   : > { %v1612_v14 = vpop.f32.mrf.mxu0 }
 0x182   : > { %598 = vst [vmem:[#allocation2] sm:$0xff] %v595_v13 }
 0x183 PF: > { %s2901_s30 = sld [smem:[#allocation45_spill]]  ;;  %v2193_v16 = vmov 0.0   ;;  %vm2194_vm2 = vmmov 0   ;;  %vm620_vm3 = vcmask 130048   ;;  %v2195_v18 = vmov 0  }
 0x184   : > { %1613 = vmatprep.subr.mxu0 %v2193_v16  ;;  %1617 = vmatprep.mubr.msk.f32.mxu0 %vm2194_vm2, %v2193_v16  ;;  %s2902_s22 = sld [smem:[#allocation44_spill]]  ;;  %vm812_vm4 = vcmask 64512   ;;  %v712_v53 = vlaneseq }
 0x185   : > { %1614 = vmatpush3.msra.mxu0 %v506_v3  ;;  %1869 = vset.pattern.permute.xlu0 %v2195_v18  ;;  %s2904_s2 = sld [smem:[#allocation26_spill]] }
 0x186   : > { %1615 = vmatprep.subr.mxu0 %v2193_v16  ;;  %1870 = vset.pattern.permute.xlu1 %v2195_v18  ;;  %v2574_v56 = vshrl.u32 %v712_v53, 7  ;;  %s746_s26 = sld [smem:[#allocation6]] }
 0x187   : > { %1616 = vmatpush3.msra.mxu0 %v505_v2 }
 0x188   : > { %v714_v58 = vadd.s32 8, %v2574_v56  ;;  %v716_v0 = vadd.s32 24, %v2574_v56  ;;  %v718_v1 = vadd.s32 40, %v2574_v56  ;;  %v717_v3 = vadd.s32 32, %v2574_v56 }
 0x189   : > { %v602_v15 = vld [vmem:[%s2901_s30] sm:$0xff]  ;;  %v603_v25 = vld [vmem:[%s2901_s30 + $0x8] sm:$0xff]  ;;  %v604_v43 = vld [vmem:[%s2901_s30 + $0x10] sm:$0xff]  ;;  %v715_v5 = vadd.s32 16, %v2574_v56  ;;  %v720_v6 = vadd.s32 56, %v2574_v56  ;;  %v719_v8 = vadd.s32 48, %v2574_v56 }
 0x18a   : > { %s2903_s3 = smov %s2902_s22  ;;  %v599_v17 = vld [vmem:[%s2902_s22] sm:$0xff]  ;;  %607 = vperm.xlu0 %1869, %v602_v15   ;;  %612 = vperm.xlu1 %1870, %v603_v25   ;;  %v722_v9 = vadd.s32 72, %v2574_v56  ;;  %v721_v10 = vadd.s32 64, %v2574_v56  ;;  %v724_v13 = vadd.s32 88, %v2574_v56  ;;  %v723_v14 = vadd.s32 80, %v2574_v56 }
 0x18b   : > { %1618 = vmatmul.mubr.msk.f32.vlgmr.msra.gmra.mxu0 %vm620_vm3, %v599_v17  ;;  %v710_v21 = vld [vmem:[#allocation2] sm:$0xff]  ;;  %v600_v24 = vld [vmem:[%s2903_s3 + $0x8] sm:$0xff]  ;;  %v601_v26 = vld [vmem:[%s2903_s3 + $0x10] sm:$0xff]  ;;  %s1530_s12 = sshll.u32 %s2904_s2, 7  ;;  %v726_v15 = vadd.s32 104, %v2574_v56  ;;  %v725_v17 = vadd.s32 96, %v2574_v56 }
 0x18c   : > { %1620 = vmatprep.mubr.msk.f32.mxu0 %vm2194_vm2, %v2193_v16  ;;  %1626 = vmatprep.subr.mxu1 %v710_v21  ;;  %v729_v60 = vstv %s1530_s12  ;;  %v2584_v63 = vstv %s746_s26  ;;  %v728_v18 = vadd.s32 120, %v2574_v56  ;;  %p1547_p8 = scmp.ne.s32.totalorder %s2904_s2, 1 }
 0x18d   : > { %1627 = vmatpush3.msra.mxu1 %v710_v21  ;;  %v731_v61 = vadd.s32 %v729_v60, %v714_v58  ;;  %v730_v4 = vadd.s32 %v729_v60, %v2574_v56  ;;  %v733_v7 = vadd.s32 %v729_v60, %v716_v0  ;;  %v735_v11 = vadd.s32 %v729_v60, %v718_v1  ;;  %s1550_s9 = sld [smem:[#allocation7 + $0x1]] (!%p1547_p8) }
 0x18e   : > { %617 = vperm.xlu1 %1870, %v604_v43   ;;  %v732_v21 = vadd.s32 %v729_v60, %v715_v5  ;;  %v739_v25 = vadd.s32 %v729_v60, %v722_v9  ;;  %s1302_s23 = sld [smem:[#allocation7]] (!%p1547_p8) }
 0x18f   : > { %1621 = vmatmul.mubr.msk.f32.gmra.mxu0 %vm620_vm3, %v600_v24  ;;  %vm749_vm5 = vcmp.lt.s32.totalorder %v731_v61, %v2584_v63  ;;  %vm748_vm6 = vcmp.lt.s32.totalorder %v730_v4, %v2584_v63  ;;  %vm751_vm7 = vcmp.lt.s32.totalorder %v733_v7, %v2584_v63  ;;  %v736_v24 = vadd.s32 %v729_v60, %v719_v8 }
 0x190   : > { %1623 = vmatprep.mubr.msk.f32.mxu0 %vm2194_vm2, %v2193_v16  ;;  %v734_v16 = vadd.s32 %v729_v60, %v717_v3  ;;  %vm753_vm8 = vcmp.lt.s32.totalorder %v735_v11, %v2584_v63  ;;  %vm750_vm10 = vcmp.lt.s32.totalorder %v732_v21, %v2584_v63  ;;  %vm757_vm13 = vcmp.lt.s32.totalorder %v739_v25, %v2584_v63 }
 0x191   : > { %vm754_vm12 = vcmp.lt.s32.totalorder %v736_v24, %v2584_v63 }
 0x192   : > { %vm752_vm9 = vcmp.lt.s32.totalorder %v734_v16, %v2584_v63 }
 0x193   : > { %1624 = vmatmul.mubr.msk.f32.gmra.mxu0 %vm620_vm3, %v601_v26  ;;  %v738_v26 = vadd.s32 %v729_v60, %v721_v10 }
 0x195   : > { %vm756_vm14 = vcmp.lt.s32.totalorder %v738_v26, %v2584_v63 }
 0x205   : > { %v608_v19 = vpop.permute.xlu0 %607  ;;  %v613_v44 = vpop.permute.xlu1 %612 }
 0x24b   : > { %v696_v20 = vpop.f32.mrf.mxu0 }
 0x24c   : > { %v697_v22 = vadd.f32 %v696_v20, %v608_v19  ;;  %v2196_v19 = vmov -1e+30  }
 0x24d   : > { %v1619_v23 = vpop.f32.mrf.mxu0  ;;  %v765_v20 = vsel %vm749_vm5, 0.0, %v2196_v19  ;;  %v773_v43 = vsel %vm757_vm13, 0.0, %v2196_v19 }
 0x24e   : > { %780 = vxpose.xlu0.b32.start.end [1/1] (short) %v697_v22, 128  ;;  %v737_v22 = vadd.s32 %v729_v60, %v720_v6 }
 0x24f   : > { %v701_v45 = vpop.f32.mrf.mxu0 }
 0x250   : > { %v702_v46 = vadd.f32 %v701_v45, %v613_v44  ;;  %vm755_vm11 = vcmp.lt.s32.totalorder %v737_v22, %v2584_v63  ;;  %v772_v44 = vsel %vm756_vm14, 0.0, %v2196_v19 }
 0x251   : > { %v1622_v47 = vpop.f32.mrf.mxu0 }
 0x253   : > { %v2562_v48 = vpop.f32.mrf.mxu0 }
 0x255   : > { %v1625_v49 = vpop.f32.mrf.mxu0 }
 0x2ca   : > { %v796_v27 = vpop.trf.xlu0 }
 0x2cb   : > { %1628 = vmatprep.mubr.msk.f32.mxu1 %vm812_vm4, %v796_v27  ;;  %v741_v27 = vadd.s32 %v729_v60, %v724_v13 }
 0x2cd   : > { %vm759_vm15 = vcmp.lt.s32.totalorder %v741_v27, %v2584_v63 }
 0x2ce   : > { %v797_v28 = vpop.trf.xlu0 }
 0x2cf   : > { %1629 = vmatmul.mubr.msk.f32.vlgmr.msra.gmra.mxu1 %vm812_vm4, %v797_v28  ;;  %v740_v28 = vadd.s32 %v729_v60, %v723_v14 }
 0x2d1   : > { %vm758_vm0 = vcmp.lt.s32.totalorder %v740_v28, %v2584_v63  ;;  %v1006_v28 = vld [vmem:[#allocation3] sm:$0x1] }
 0x2d2   : > { %v798_v29 = vpop.trf.xlu0  ;;  %v774_v47 = vsel %vm758_vm0, 0.0, %v2196_v19 }
 0x2d3   : > { %1631 = vmatprep.mubr.msk.f32.mxu1 %vm812_vm4, %v798_v29  ;;  %v743_v29 = vadd.s32 %v729_v60, %v726_v15 }
 0x2d5   : > { %vm761_vm1 = vcmp.lt.s32.totalorder %v743_v29, %v2584_v63 }
 0x2d6   : > { %v799_v30 = vpop.trf.xlu0  ;;  %v777_v49 = vsel %vm761_vm1, 0.0, %v2196_v19 }
 0x2d7   : > { %1632 = vmatmul.mubr.msk.f32.gmra.mxu1 %vm812_vm4, %v799_v30  ;;  %v742_v30 = vadd.s32 %v729_v60, %v725_v17 }
 0x2d9   : > { %vm760_vm2 = vcmp.lt.s32.totalorder %v742_v30, %v2584_v63  ;;  %v2678_v30 = vsub.s32 0, %v2574_v56 }
 0x2da   : > { %v800_v31 = vpop.trf.xlu0 }
 0x2db   : > { %1634 = vmatprep.mubr.msk.f32.mxu1 %vm812_vm4, %v800_v31  ;;  %v745_v31 = vadd.s32 %v729_v60, %v728_v18 }
 0x2de   : > { %v801_v32 = vpop.trf.xlu0 }
 0x2df   : > { %1635 = vmatmul.mubr.msk.f32.gmra.mxu1 %vm812_vm4, %v801_v32  ;;  %v727_v32 = vadd.s32 112, %v2574_v56 }
 0x2e2   : > { %v802_v33 = vpop.trf.xlu0 }
 0x2e3   : > { %1637 = vmatprep.mubr.msk.f32.mxu1 %vm812_vm4, %v802_v33  ;;  %v764_v33 = vsel %vm748_vm6, 0.0, %v2196_v19 }
 0x2e6   : > { %v803_v34 = vpop.trf.xlu0 }
 0x2e7   : > { %1638 = vmatmul.mubr.msk.f32.gmra.mxu1 %vm812_vm4, %v803_v34  ;;  %v767_v34 = vsel %vm751_vm7, 0.0, %v2196_v19 }
 0x2ea   : > { %v804_v35 = vpop.trf.xlu0 }
 0x2eb   : > { %1640 = vmatprep.mubr.msk.f32.mxu1 %vm812_vm4, %v804_v35 }
 0x2ee   : > { %v805_v36 = vpop.trf.xlu0 }
 0x2ef   : > { %1641 = vmatmul.mubr.msk.f32.gmra.mxu1 %vm812_vm4, %v805_v36  ;;  %v769_v36 = vsel %vm753_vm8, 0.0, %v2196_v19 }
 0x2f2   : > { %v806_v37 = vpop.trf.xlu0 }
 0x2f3   : > { %1643 = vmatprep.mubr.msk.f32.mxu1 %vm812_vm4, %v806_v37  ;;  %v768_v37 = vsel %vm752_vm9, 0.0, %v2196_v19 }
 0x2f6   : > { %v807_v38 = vpop.trf.xlu0 }
 0x2f7   : > { %1644 = vmatmul.mubr.msk.f32.gmra.mxu1 %vm812_vm4, %v807_v38 }
 0x2fa   : > { %v808_v39 = vpop.trf.xlu0 }
 0x2fb   : > { %1646 = vmatprep.mubr.msk.f32.mxu1 %vm812_vm4, %v808_v39  ;;  %v771_v39 = vsel %vm755_vm11, 0.0, %v2196_v19 }
 0x2fe   : > { %v809_v40 = vpop.trf.xlu0 }
 0x2ff   : > { %1647 = vmatmul.mubr.msk.f32.gmra.mxu1 %vm812_vm4, %v809_v40  ;;  %v744_v40 = vadd.s32 %v729_v60, %v727_v32  ;;  %v776_v60 = vsel %vm760_vm2, 0.0, %v2196_v19 }
 0x301   : > { %vm762_vm5 = vcmp.lt.s32.totalorder %v744_v40, %v2584_v63 }
 0x302   : > { %v810_v41 = vpop.trf.xlu0 }
 0x303   : > { %1649 = vmatprep.mubr.msk.f32.mxu1 %vm812_vm4, %v810_v41  ;;  %v766_v41 = vsel %vm750_vm10, 0.0, %v2196_v19 }
 0x306   : > { %v811_v42 = vpop.trf.xlu0 }
 0x307   : > { %1650 = vmatmul.mubr.msk.f32.gmra.mxu1 %vm812_vm4, %v811_v42  ;;  %vm763_vm4 = vcmp.lt.s32.totalorder %v745_v31, %v2584_v63  ;;  %v770_v42 = vsel %vm754_vm12, 0.0, %v2196_v19 }
 0x308   : > { %1684 = vmatprep.mubr.f32.mxu1 %v702_v46  ;;  %v775_v46 = vsel %vm759_vm15, 0.0, %v2196_v19  ;;  %v779_v0 = vsel %vm763_vm4, 0.0, %v2196_v19 }
 0x38f   : > { %v2564_v50 = vpop.f32.mrf.mxu1 }
 0x391   : > { %v2566_v51 = vpop.f32.mrf.mxu1 }
 0x397   : > { %v2568_v52 = vpop.f32.mrf.mxu1 }
 0x399   : > { %v2570_v54 = vpop.f32.mrf.mxu1 }
 0x39a   : > { %v2664_v4 = vadd.f32 %v2570_v54, %v766_v41 }
 0x39f   : > { %v2572_v55 = vpop.f32.mrf.mxu1 }
 0x3a0   : > { %v2641_v53 = vadd.f32 %v2572_v55, %v769_v36  ;;  %v2658_v55 = vadd.f32 %v2564_v50, %v765_v20 }
 0x3a1   : > { %v2577_v57 = vpop.f32.mrf.mxu1 }
 0x3a2   : > { %v2635_v45 = vadd.f32 %v2577_v57, %v768_v37  ;;  %v2649_v57 = vadd.f32 %v2566_v51, %v764_v33  ;;  %v1008_v63 = vmax.f32 %v2658_v55, %v2641_v53 }
 0x3a4   : > { %v1007_v51 = vmax.f32 %v2649_v57, %v2635_v45 }
 0x3a7   : > { %v2580_v59 = vpop.f32.mrf.mxu1 }
 0x3a8   : > { %v2644_v58 = vadd.f32 %v2580_v59, %v771_v39  ;;  %v2661_v59 = vadd.f32 %v2568_v52, %v767_v34  ;;  %v778_v52 = vsel %vm762_vm5, 0.0, %v2196_v19 }
 0x3a9   : > { %v2582_v62 = vpop.f32.mrf.mxu1 }
 0x3aa   : > { %v2652_v1 = vadd.f32 %v2582_v62, %v770_v42  ;;  %v1010_v50 = vmax.f32 %v2661_v59, %v2644_v58 }
 0x3ac   : > { %v1009_v54 = vmax.f32 %v2664_v4, %v2652_v1 }
 0x3af   : > { %v2588_v2 = vpop.f32.mrf.mxu1 }
 0x3b0   : > { %v973_v5 = vadd.f32 %v2588_v2, %v773_v43 }
 0x3b1   : > { %v967_v12 = vpop.f32.mrf.mxu1 }
 0x3b2   : > { %v2654_v3 = vadd.f32 %v967_v12, %v772_v44  ;;  %v1012_v11 = vmax.f32 %v1008_v63, %v973_v5 }
 0x3b4   : > { %v1011_v2 = vmax.f32 %v1007_v51, %v2654_v3 }
 0x3b7   : > { %v1645_v23 = vpop.f32.mrf.mxu1 }
 0x3b8   : > { %v983_v62 = vadd.f32 %v1645_v23, %v775_v46 }
 0x3b9   : > { %v977_v35 = vpop.f32.mrf.mxu1 }
 0x3ba   : > { %v978_v6 = vadd.f32 %v977_v35, %v774_v47  ;;  %v1014_v13 = vmax.f32 %v1010_v50, %v983_v62 }
 0x3bc   : > { %v1013_v14 = vmax.f32 %v1009_v54, %v978_v6 }
 0x3bf   : > { %v1648_v38 = vpop.f32.mrf.mxu1 }
 0x3c0   : > { %v993_v9 = vadd.f32 %v1648_v38, %v777_v49 }
 0x3c1   : > { %v987_v61 = vpop.f32.mrf.mxu1 }
 0x3c2   : > { %v988_v7 = vadd.f32 %v987_v61, %v776_v60  ;;  %v1016_v17 = vmax.f32 %v1012_v11, %v993_v9 }
 0x3c4   : > { %v1015_v15 = vmax.f32 %v1011_v2, %v988_v7 }
 0x3c6   : > { %v1019_v21 = vmax.f32 %v1015_v15, %v1016_v17 }
 0x3c7   : > { %v1651_v8 = vpop.f32.mrf.mxu1 }
 0x3c8   : > { %v1003_v10 = vadd.f32 %v1651_v8, %v779_v0 }
 0x3c9   : > { %v997_v12 = vpop.f32.mrf.mxu1 }
 0x3ca   : > { %v998_v16 = vadd.f32 %v997_v12, %v778_v52  ;;  %v1018_v18 = vmax.f32 %v1014_v13, %v1003_v10 }
 0x3cc   : > { %v1017_v20 = vmax.f32 %v1013_v14, %v998_v16 }
 0x3ce   : > { %v1020_v22 = vmax.f32 %v1017_v20, %v1018_v18 }
 0x3d0   : > { %v1021_v23 = vmax.f32 %v1019_v21, %v1020_v22 }
 0x3d2   : > { %v1022_v19 = vrot.slane %v1021_v23, 4 }
 0x3d4   : > { %v1023_v24 = vmax.f32 %v1021_v23, %v1022_v19 }
 0x3d6   : > { %v1024_v25 = vrot.slane %v1023_v24, 2 }
 0x3d8   : > { %v1025_v26 = vmax.f32 %v1023_v24, %v1024_v25 }
 0x3da   : > { %v1026_v27 = vrot.slane %v1025_v26, 1 }
 0x3dc   : > { %v1027_v29 = vmax.f32 %v1025_v26, %v1026_v27 }
 0x3de   : > { %v1028_v31 = vmax.f32 %v1006_v28, %v1027_v29  ;;  %v618_v29 = vpop.permute.xlu1 %617 }
 0x3e0   : > { %v1036_v32 = vrot.slane %v1028_v31, %v2678_v30  ;;  %1200 = vst [vmem:[#allocation3] sm:$0x1] %v1028_v31  ;;  %v1029_v0 = vsub.f32 %v1006_v28, %v1028_v31 }
 0x3e2   : > { %v1052_v33 = vsub.f32 %v998_v16, %v1036_v32  ;;  %v1053_v34 = vsub.f32 %v1003_v10, %v1036_v32  ;;  %v1051_v35 = vsub.f32 %v993_v9, %v1036_v32  ;;  %v1050_v38 = vsub.f32 %v988_v7, %v1036_v32 }
 0x3e3   : > { %v1049_v40 = vsub.f32 %v983_v62, %v1036_v32  ;;  %v1048_v41 = vsub.f32 %v978_v6, %v1036_v32  ;;  %v1047_v43 = vsub.f32 %v973_v5, %v1036_v32  ;;  %v1046_v56 = vsub.f32 %v2654_v3, %v1036_v32 }
 0x3e4   : > { %v1084_v36 = vmul.f32 1.442695, %v1053_v34  ;;  %v1082_v37 = vmul.f32 1.442695, %v1052_v33  ;;  %v1080_v39 = vmul.f32 1.442695, %v1051_v35  ;;  %v1045_v46 = vsub.f32 %v2644_v58, %v1036_v32 }
 0x3e5   : > { %v1078_v42 = vmul.f32 1.442695, %v1050_v38  ;;  %v1076_v44 = vmul.f32 1.442695, %v1049_v40  ;;  %v1074_v47 = vmul.f32 1.442695, %v1048_v41  ;;  %v1039_v49 = vsub.f32 %v2658_v55, %v1036_v32 }
 0x3e6   : > { %1871 = vpow2.f32 %v1084_v36  ;;  %v1072_v60 = vmul.f32 1.442695, %v1047_v43  ;;  %v1038_v61 = vsub.f32 %v2649_v57, %v1036_v32  ;;  %v1070_v51 = vmul.f32 1.442695, %v1046_v56  ;;  %v1086_v56 = vld [vmem:[#allocation4] sm:$0x1] }
 0x3e7   : > { %1873 = vpow2.f32 %v1082_v37  ;;  %v1068_v62 = vmul.f32 1.442695, %v1045_v46  ;;  %v1040_v6 = vsub.f32 %v2664_v4, %v1036_v32  ;;  %v1044_v3 = vsub.f32 %v2652_v1, %v1036_v32 }
 0x3e8   : > { %1875 = vpow2.f32 %v1080_v39  ;;  %v1056_v5 = vmul.f32 1.442695, %v1039_v49  ;;  %v1041_v58 = vsub.f32 %v2661_v59, %v1036_v32  ;;  %v1054_v7 = vmul.f32 1.442695, %v1038_v61  ;;  %v1112_v49 = vld [vmem:[#allocation5 + $0x8] sm:$0xff] }
 0x3e9   : > { %1877 = vpow2.f32 %v1078_v42  ;;  %v1043_v55 = vsub.f32 %v2641_v53, %v1036_v32  ;;  %v1030_v63 = vmul.f32 1.442695, %v1029_v0  ;;  %v1042_v57 = vsub.f32 %v2635_v45, %v1036_v32 }
 0x3ea   : > { %1879 = vpow2.f32 %v1076_v44  ;;  %v1058_v50 = vmul.f32 1.442695, %v1040_v6  ;;  %v1066_v52 = vmul.f32 1.442695, %v1044_v3  ;;  %v1060_v1 = vmul.f32 1.442695, %v1041_v58 }
 0x3eb   : > { %1881 = vpow2.f32 %v1074_v47  ;;  %v1064_v59 = vmul.f32 1.442695, %v1043_v55  ;;  %v1062_v53 = vmul.f32 1.442695, %v1042_v57  ;;  %v707_v32 = vadd.f32 %v2562_v48, %v618_v29 }
 0x3ec   : > { %1883 = vpow2.f32 %v1072_v60  ;;  %v1111_v60 = vld [vmem:[#allocation5] sm:$0xff] }
 0x3ed   : > { %1885 = vpow2.f32 %v1070_v51 }
 0x3ee   : > { %1887 = vpow2.f32 %v1068_v62 }
 0x3ef   : > { %1889 = vpow2.f32 %v1056_v5 }
 0x3f0   : > { %1891 = vpow2.f32 %v1054_v7 }
 0x3f1   : > { %1893 = vpow2.f32 %v1030_v63 }
 0x3f2   : > { %1895 = vpow2.f32 %v1058_v50 }
 0x3f3   : > { %v2690_v8 = vpop.eup %1871  ;;  %1897 = vpow2.f32 %v1066_v52 }
 0x3f4   : > { %1652 = vmatprep.subr.mxu1 %v2690_v8  ;;  %v2693_v4 = vpop.eup %1873  ;;  %1899 = vpow2.f32 %v1060_v1 }
 0x3f5   : > { %1653 = vmatpush3.msra.mxu1 %v2690_v8  ;;  %v2697_v45 = vpop.eup %1875  ;;  %1901 = vpow2.f32 %v1064_v59 }
 0x3f6   : > { %1654 = vmatprep.subr.mxu1 %v2693_v4  ;;  %v1878_v54 = vpop.eup %1877  ;;  %1903 = vpow2.f32 %v1062_v53 }
 0x3f7   : > { %1655 = vmatpush3.msra.mxu1 %v2693_v4  ;;  %v1880_v2 = vpop.eup %1879 }
 0x3f8   : > { %1656 = vmatprep.subr.mxu1 %v2697_v45  ;;  %v1882_v9 = vpop.eup %1881 }
 0x3f9   : > { %1657 = vmatpush3.msra.mxu1 %v2697_v45  ;;  %v1884_v10 = vpop.eup %1883 }
 0x3fa   : > { %1658 = vmatprep.subr.mxu1 %v1878_v54  ;;  %v1886_v11 = vpop.eup %1885 }
 0x3fb   : > { %1659 = vmatpush3.msra.mxu1 %v1878_v54  ;;  %v1888_v12 = vpop.eup %1887 }
 0x3fc   : > { %1660 = vmatprep.subr.mxu1 %v1880_v2  ;;  %v1890_v13 = vpop.eup %1889 }
 0x3fd   : > { %1661 = vmatpush3.msra.mxu1 %v1880_v2  ;;  %v1892_v14 = vpop.eup %1891 }
 0x3fe   : > { %1662 = vmatprep.subr.mxu1 %v1882_v9  ;;  %v1894_v15 = vpop.eup %1893  ;;  %v1088_v16 = vadd.f32 %v1892_v14, %v1890_v13 }
 0x3ff   : > { %1663 = vmatpush3.msra.mxu1 %v1882_v9  ;;  %v1896_v17 = vpop.eup %1895  ;;  %v1117_v18 = vrot.slane %v1894_v15, %v2678_v30  ;;  %v1087_v48 = vmul.f32 %v1894_v15, %v1086_v56 }
 0x400   : > { %1664 = vmatprep.subr.mxu1 %v1884_v10  ;;  %v1898_v20 = vpop.eup %1897  ;;  %v1089_v21 = vadd.f32 %v1896_v17, %v1088_v16 }
 0x401   : > { %1665 = vmatpush3.msra.mxu1 %v1884_v10  ;;  %v1900_v22 = vpop.eup %1899  ;;  %v1120_v61 = vmul.f32 %v1117_v18, %v1112_v49  ;;  %v1119_v62 = vmul.f32 %v1117_v18, %v1111_v60 }
 0x402   : > { %1666 = vmatprep.subr.mxu1 %v1886_v11  ;;  %v1902_v23 = vpop.eup %1901  ;;  %v1090_v19 = vadd.f32 %v1900_v22, %v1089_v21 }
 0x403   : > { %1667 = vmatpush3.msra.mxu1 %v1886_v11  ;;  %v1904_v24 = vpop.eup %1903 }
 0x404   : > { %1668 = vmatprep.subr.mxu1 %v1888_v12  ;;  %v1091_v25 = vadd.f32 %v1904_v24, %v1090_v19 }
 0x405   : > { %1669 = vmatpush3.msra.mxu1 %v1888_v12 }
 0x406   : > { %1670 = vmatprep.subr.mxu1 %v1898_v20  ;;  %v1092_v26 = vadd.f32 %v1902_v23, %v1091_v25 }
 0x407   : > { %1671 = vmatpush3.msra.mxu1 %v1898_v20 }
 0x408   : > { %1672 = vmatprep.subr.mxu1 %v1902_v23  ;;  %v1093_v27 = vadd.f32 %v1898_v20, %v1092_v26 }
 0x409   : > { %1673 = vmatpush3.msra.mxu1 %v1902_v23 }
 0x40a   : > { %1674 = vmatprep.subr.mxu1 %v1904_v24  ;;  %v1094_v28 = vadd.f32 %v1888_v12, %v1093_v27 }
 0x40b   : > { %1675 = vmatpush3.msra.mxu1 %v1904_v24 }
 0x40c   : > { %1676 = vmatprep.subr.mxu1 %v1900_v22  ;;  %v1095_v31 = vadd.f32 %v1886_v11, %v1094_v28 }
 0x40d   : > { %1677 = vmatpush3.msra.mxu1 %v1900_v22 }
 0x40e   : > { %1678 = vmatprep.subr.mxu1 %v1896_v17  ;;  %v1096_v33 = vadd.f32 %v1884_v10, %v1095_v31 }
 0x40f   : > { %1679 = vmatpush3.msra.mxu1 %v1896_v17 }
 0x410   : > { %1680 = vmatprep.subr.mxu1 %v1890_v13  ;;  %v1097_v34 = vadd.f32 %v1882_v9, %v1096_v33 }
 0x411   : > { %1681 = vmatpush3.msra.mxu1 %v1890_v13 }
 0x412   : > { %1682 = vmatprep.subr.mxu1 %v1892_v14  ;;  %v1098_v35 = vadd.f32 %v1880_v2, %v1097_v34 }
 0x413   : > { %1683 = vmatpush3.msra.mxu1 %v1892_v14 }
 0x414   : > { %1685 = vmatmul.mubr.f32.vlgmr.msra.gmra.mxu1 %v707_v32  ;;  %v1099_v36 = vadd.f32 %v1878_v54, %v1098_v35 }
 0x416   : > { %v1100_v37 = vadd.f32 %v2697_v45, %v1099_v36 }
 0x418   : > { %v1101_v38 = vadd.f32 %v2693_v4, %v1100_v37 }
 0x41a   : > { %v1102_v39 = vadd.f32 %v2690_v8, %v1101_v38 }
 0x41c   : > { %v1103_v40 = vrot.slane %v1102_v39, 4 }
 0x41e   : > { %v1104_v41 = vadd.f32 %v1103_v40, %v1102_v39 }
 0x420   : > { %v1105_v42 = vrot.slane %v1104_v41, 2 }
 0x422   : > { %v1106_v43 = vadd.f32 %v1105_v42, %v1104_v41 }
 0x424   : > { %v1107_v44 = vrot.slane %v1106_v43, 1 }
 0x426   : > { %v1108_v46 = vadd.f32 %v1107_v44, %v1106_v43 }
 0x428   : > { %v1109_v47 = vadd.f32 %v1108_v46, %v1087_v48 }
 0x42a   : > { %1110 = vst [vmem:[#allocation4] sm:$0x1] %v1109_v47 }
 0x4d4   : > { %v1686_v0 = vpop.f32.mrf.mxu1 }
 0x4d5   : > { %v1197_v51 = vadd.f32 %v1686_v0, %v1120_v61  ;;  %1204 = sbr.rel (%p1547_p8) target bundleno = 1483 (0x5cb), region = 118 }
 0x4d6   : > { %v1187_v6 = vpop.f32.mrf.mxu1 }
 0x4d7   : > { %1199 = vst [vmem:[#allocation5 + $0x8] sm:$0xff] %v1197_v51  ;;  %v1196_v3 = vadd.f32 %v1187_v6, %v1119_v62 }
 0x4d9   : > { %1198 = vst [vmem:[#allocation5] sm:$0xff] %v1196_v3 }
 0x4da   : > { %v1206_v5 = vld [vmem:[%s2495_s21 + $0x8] sm:$0xff]  ;;  %v1205_v58 = vld [vmem:[%s2495_s21] sm:$0xff]  ;;  %v1307_v4 = vstv %s1550_s9  ;;  %v1304_v53 = vstv %s1302_s23 }
 0x4db   : > { %v1207_v7 = vld [vmem:[%s456_s0] sm:$0xff]  ;;  %1687 = vmatprep.subr.mxu0 %v1206_v5  ;;  %v1208_v55 = vld [vmem:[%s456_s0 + $0x8] sm:$0xff] }
 0x4dc   : > { %1691 = vmatprep.mubr.msk.f32.mxu0 %vm620_vm3, %v1207_v7  ;;  %1688 = vmatpush3.msra.mxu0 %v1206_v5  ;;  %v1292_v63 = vld [vmem:[#allocation4] sm:$0x1] }
 0x4dd   : > { %1689 = vmatprep.subr.mxu0 %v1205_v58  ;;  %1905 = vrcp.f32 %v1292_v63 }
 0x4de   : > { %1690 = vmatpush3.msra.mxu0 %v1205_v58  ;;  %v1291_v8 = vld [vmem:[#allocation5 + $0x8] sm:$0xff] }
 0x4df   : > { %1692 = vmatmul.mubr.msk.f32.vlgmr.msra.gmra.mxu0 %vm620_vm3, %v1208_v55 }
 0x4e0   : > { %v1290_v52 = vld [vmem:[#allocation5] sm:$0xff] }
 0x4ea   : > { %v1906_v57 = vpop.eup %1905 }
 0x4eb   : > { %v1298_v50 = vrot.slane %v1906_v57, %v2678_v30 }
 0x4ed   : > { %v1301_v1 = vmul.f32 %v1298_v50, %v1291_v8  ;;  %v1300_v59 = vmul.f32 %v1298_v50, %v1290_v52 }
 0x4ef   : > { %v1309_v45 = vmul.f32 %v1307_v4, %v1301_v1  ;;  %v1308_v9 = vmul.f32 %v1307_v4, %v1300_v59 }
 0x59f   : > { %v1693_v54 = vpop.f32.mrf.mxu0 }
 0x5a0   : > { %v1306_v2 = vmul.f32 %v1693_v54, %v1304_v53 }
 0x5a1   : > { %v1281_v10 = vpop.f32.mrf.mxu0 }
 0x5a2   : > { %v1311_v11 = vmul.f32 %v1309_v45, %v1306_v2  ;;  %v1305_v12 = vmul.f32 %v1304_v53, %v1281_v10 }
 0x5a4   : > { %v1552_v13 = vmul.f32 -1.442695, %v1311_v11  ;;  %v1310_v14 = vmul.f32 %v1308_v9, %v1305_v12 }
 0x5a6   : > { %1907 = vpow2.f32 %v1552_v13  ;;  %v1551_v15 = vmul.f32 -1.442695, %v1310_v14 }
 0x5a8   : > { %1909 = vpow2.f32 %v1551_v15 }
 0x5b3   : > { %v1908_v30 = vpop.eup %1907 }
 0x5b4   : > { %v1319_v16 = vadd.f32 1.0, %v1908_v30 }
 0x5b5   : > { %v1910_v17 = vpop.eup %1909 }
 0x5b6   : > { %1911 = vrcp.f32 %v1319_v16  ;;  %v1318_v18 = vadd.f32 1.0, %v1910_v17 }
 0x5b8   : > { %1913 = vrcp.f32 %v1318_v18 }
 0x5c3   : > { %v1912_v20 = vpop.eup %1911 }
 0x5c4   : > { %v1325_v21 = vadd.f32 1.0, %v1912_v20 }
 0x5c5   : > { %v1914_v22 = vpop.eup %1913 }
 0x5c6   : > { %v1327_v23 = vmul.f32 %v1325_v21, %v1206_v5  ;;  %v1324_v19 = vadd.f32 1.0, %v1914_v22 }
 0x5c8   : > { %1329 = vst [vmem:[%s2514_s20 + $0x8] sm:$0xff] %v1327_v23  ;;  %v1326_v24 = vmul.f32 %v1324_v19, %v1205_v58 }
 0x5ca   : > { %1328 = vst [vmem:[%s2514_s20] sm:$0xff] %v1326_v24 }
 0x5cb PF: > { %s2905_s21 = sld [smem:[#allocation28_spill]]  ;;  %s1345_s7 = sshll.u32 %s2514_s20, 4  ;;  %s2722_s7 = int_to_ptr.vmem [resolvable:$true] %s1345_s7 }
 0x5cc   : > { %s2906_s16 = sld [smem:[#allocation27_spill]]  ;;  %s2731_s19 = scalar_lea.sflag [#allocation9], %s437_s1 }
 0x5cd   : > { %s2907_s11 = sld [smem:[#allocation46_spill]]  ;;  %s2008_s15 = scalar_lea.vmem %s2722_s7, 256 }
 0x5ce   : > { %p2009_p11 = scmp.ne.s32.totalorder %s2722_s7, %s2008_s15  ;;  %p2909_p10 = scmp.ne.s32.totalorder %s2878_s8, 0 }
 0x5cf   : > { %s2197_s20 = smov [#allocation16]  }
 0x5d0   : > { %p2010_p7 = pnand %p2009_p11, %p2909_p10  ;;  %s2012_s10 = sshll.u32 %s2197_s20, 4  ;;  %s2013_s10 = int_to_ptr.vmem [resolvable:$false] %s2012_s10 }
 0x5d1   : > { %s1554_s0 = sshll.u32 %s2905_s21, 2  ;;  %s2014_s27 = scalar_lea.vmem %s2013_s10, 512 }
 0x5d2   : > { %s1342_s18 = sadd.s32 %s2906_s16, %s1554_s0  ;;  %p2011_p4 = pneg %p2010_p7 }
 0x5d3   : > { %s1555_s5 = sshll.u32 %s1342_s18, 7  ;;  %s2908_s6 = smov %s2907_s11 }
 0x5d4   : > { %s2727_s29 = scalar_lea.hbm %s2907_s11, %s1555_s5  ;;  %p2015_p6 = scmp.lt.s32.totalorder %s2722_s7, %s2013_s10 }
 0x5d5   : > { %p2016_p9 = scmp.lt.s32.totalorder %s2014_s27, %s2008_s15 }
 0x5d7   : > { %p2017_p5 = por %p2016_p9, %p2015_p6 }
 0x5d9   : > { %p2018_p0 = pnand %p2017_p5, %p2011_p4 }
 0x5db   : > { %2021 = shalt.err (!%p2018_p0)
}
 0x5dc   : > { %s2022_s1 = scalar_lea.hbm %s2727_s29, 256  ;;  %s2026_s12 = scalar_lea.hbm %s2908_s6, 1024 }
 0x5dd   : > { %p2023_p1 = scmp.ne.s32.totalorder %s2727_s29, %s2022_s1  ;;  %p2027_p3 = scmp.lt.s32.totalorder %s2727_s29, %s2908_s6 }
 0x5de   : > { %p2028_p12 = scmp.lt.s32.totalorder %s2026_s12, %s2022_s1 }
 0x5df   : > { %p2024_p2 = pnand %p2023_p1, %p2909_p10 }
 0x5e0   : > { %p2029_p8 = por %p2028_p12, %p2027_p3 }
 0x5e1   : > { %p2025_p13 = pneg %p2024_p2 }
 0x5e3   : > { %p2030_p11 = pnand %p2029_p8, %p2025_p13 }
 0x5e5   : > { %2033 = shalt.err (!%p2030_p11)
}
 0x5e6   : > { %s2198_s21 = smov 128   ;;  %s2199_s16 = smov 256  }
 0x5e7   : > { %s2200_s0 = smov 8  }
 0x5e8   : > { %1706 = dma.vmem_to_hbm [thread:$0]  (%p2909_p10), %s2722_s7, 256, %s2727_s29, %s2731_s19, %s2198_s21, %s2199_s16, %s2200_s0  }
 0x5e9 PF: > { %s2910_s18 = sld [smem:[#allocation22_spill]]  ;;  %p1723_p7 = scmp.ge.s32.totalorder %s2180_s25, 2 }
 0x5ea   : > { %s2911_s5 = sld [smem:[#allocation38_spill]] }
 0x5ef   : > { %s1360_s22 = sand.u32 1, %s2910_s18  }
 0x5f0   : > { %p2912_p4 = scmp.ne.s32.totalorder %s2911_s5, 0  ;;  %s1361_s28 = scalar_lea.sflag [#allocation9], %s1360_s22 }
 0x5f2   : > { %p1716_p6 = pnand %p1723_p7, %p2912_p4 }
 0x5f4   : > { %p1717_p9 = pneg %p1716_p6 }
 0x5f6   : > { %2115 = dma.done.wait (%p1717_p9), %s1361_s28, 256  }
 0x5f7   : > { %2117 = vsyncadd (%p1717_p9), %s1361_s28, 4294967040  ;;  %s30_s25 = sadd.s32 1, %s2180_s25   ;;  %s2915_s8 = sld [smem:[#allocation37_spill]] }
 0x5f8   : > { %p2759_p5 = scmp.ge.s32.totalorder %s30_s25, 10   ;;  %s2916_s7 = sld [smem:[#allocation23_spill]] }
 0x5f9   : > { %s2917_s16 = sld [smem:[#allocation24_spill]]  ;;  %s2926_s11 = smov %s2148_s17 }
 0x5fa   : > { %s2918_s1 = sld [smem:[#allocation36_spill]]  ;;  %s2928_s12 = smov %s2128_s13 }
 0x5fb   : > { %s2919_s29 = sld [smem:[#allocation25_spill]]  ;;  %s2929_s13 = smov %s2132_s14 }
 0x5fc   : > { %s2920_s18 = sld [smem:[#allocation35_spill]]  ;;  %s2933_s21 = smov %s2176_s24 }
 0x5fd   : > { %s2921_s19 = sld [smem:[#allocation29_spill]]  ;;  %s2930_s14 = smov %s2915_s8 }
 0x5fe   : > { %s2922_s20 = sld [smem:[#allocation30_spill]]  ;;  %s2931_s15 = smov %s2916_s7 }
 0x5ff   : > { %s2923_s22 = sld [smem:[#allocation31_spill]] }
 0x600   : > { %s2924_s23 = sld [smem:[#allocation32_spill]] }
 0x601   : > { %s2925_s10 = sld [smem:[#allocation33_spill]]  ;;  %s2932_s17 = smov %s2919_s29 }
 0x603   :  { %29 = sbr.rel (!%p2759_p5) target bundleno = 24 (0x18), region = 177 }
 0x607   : > { %s2934_s24 = smov %s2925_s10 }
 0x608   :  { %1366 = vsyncpa [#allocation8], 1 }
 0x609   :  { %1368 = vsyncpa [#allocation8 + $0x1], 1 }
 0x60a   :  { %1369 = vsyncpa [#allocation14], 1 }
 0x60b   :  { %1371 = vsyncpa [#allocation14 + $0x1], 1 }
 0x60c   :  { %1372 = vsyncpa [#allocation9], 1 }
 0x60d   :  { %1374 = vsyncpa [#allocation9 + $0x1], 1 }
 0x60e   :  { %1375 = vsyncpa [#allocation10], 1 }
 0x60f   :  { %1377 = vsyncpa [#allocation10 + $0x1], 1 }

</bundles_post_ra>
